<compile_context>
chip_gen: v7x
topology: tpu7x:2x2x1
jax: 0.10.0
libtpu: 0.0.40
codegen_flags: <defaults>
</compile_context>

<pallas_src>
import functools

import jax
import jax.numpy as jnp
from jax import lax
from jax.experimental import pallas as pl
from jax.experimental.pallas import tpu as pltpu

LN_EPS = 1e-12


def _next_cand_kernel(x_ref, w1_ref, b1_ref, gw2_ref, scal_ref, o_ref,
                      xb_ref, s1_ref, s2_ref, s3_ref):
    """One (tile_n, H) row tile x one (H, tile_h) column block of w1.

    Grid = (row_tiles, col_tiles); the column axis is a reduction axis
    (accumulates s1/s2/s3 in scratch, finalizes on the last column block).
    """
    j = pl.program_id(1)

    @pl.when(j == 0)
    def _init():
        # Cast the f32 x tile to bf16 once per row tile; reused across all
        # column blocks of w1 (the x block index does not change with j).
        xb_ref[...] = x_ref[...].astype(jnp.bfloat16)
        s1_ref[...] = jnp.zeros_like(s1_ref)
        s2_ref[...] = jnp.zeros_like(s2_ref)
        s3_ref[...] = jnp.zeros_like(s3_ref)

    # Linear(H, tile_h) on the MXU: bf16 feeds, f32 accumulation.
    h = jnp.dot(xb_ref[...], w1_ref[...], preferred_element_type=jnp.float32)
    # Bias + ReLU on the VPU (f32).
    h = jnp.maximum(h + b1_ref[...], 0.0)

    # Single-pass statistics (no centered temporary).  Zero-padded w1 columns
    # (if any) produce h == 0 and contribute nothing to the sums.
    s1_ref[...] += jnp.sum(h, axis=-1, keepdims=True)
    s2_ref[...] += jnp.sum(h * h, axis=-1, keepdims=True)
    s3_ref[...] += jnp.sum(h * gw2_ref[...], axis=-1, keepdims=True)

    @pl.when(j == pl.num_programs(1) - 1)
    def _finalize():
        inv_h = scal_ref[0]   # 1 / H   (true H, not padded)
        gsum = scal_ref[1]    # sum(gamma * W2)
        c = scal_ref[2]       # beta . W2 + b2
        mean = s1_ref[...] * inv_h
        var = jnp.maximum(s2_ref[...] * inv_h - mean * mean, 0.0)
        inv = lax.rsqrt(var + LN_EPS)
        proj = s3_ref[...] - mean * gsum
        # NOTE: rows beyond the valid N (masked edge block) hold garbage but are
        # row-local and dropped by the masked output writeback.
        o_ref[...] = (inv * proj + c).astype(o_ref.dtype)

    # TODO(synk): nn.Dropout omitted (identity in eval mode); training-mode
    # parity would need a pltpu.prng_random_bits mask.


def _round_up(v, m):
    return ((v + m - 1) // m) * m


def _vmem_capacity_bytes():
    try:
        return int(getattr(pltpu.get_tpu_info(), "vmem_capacity_bytes",
                           128 * 1024 * 1024))
    except Exception:
        return 128 * 1024 * 1024


def _vmem_need_bytes(tile_n, h, tile_h):
    """Rough per-step VMEM footprint: pipeline buffers + scratch + f32 temps."""
    f32, bf16, lane = 4, 2, 128
    hp = _round_up(h, lane)
    tp = _round_up(tile_h, lane)
    need = 0
    need += 2 * tile_n * hp * f32        # x block (f32), double-buffered
    need += tile_n * hp * bf16           # bf16 copy of the x tile (scratch)
    need += 2 * h * tp * bf16            # w1 column block (bf16), double-buffered
    need += 2 * 2 * 8 * tp * f32         # b1 + gw2 blocks (sublane-padded)
    need += 2 * tile_n * lane * f32      # (tile_n, 1) output block (lane-padded)
    need += 3 * tile_n * lane * f32      # s1/s2/s3 accumulators (lane-padded)
    need += 3 * tile_n * tp * f32        # h and elementwise temporaries
    return need


def _pick_tiles(n, h, vmem_cap, tile_n_override):
    # Stream w1 column blocks only when the double-buffered resident weight
    # would dominate the per-generation VMEM budget (H ~4k+ on v7x).
    if 2 * h * h * 2 <= vmem_cap // 3:
        tile_h = h
    else:
        tile_h = 1024  # multiple of 128
    if tile_n_override is not None:
        tile_n = max(8, (int(tile_n_override) // 8) * 8)
    else:
        base = 1024 if h <= 1024 else (512 if h <= 2048 else 256)
        tile_n = min(base, _round_up(max(n, 1), 256))
    while tile_n > 256 and _vmem_need_bytes(tile_n, h, tile_h) > vmem_cap:
        tile_n //= 2
    return tile_n, tile_h


@functools.partial(jax.jit, static_argnames=("tile_n",))
def next_candidate_prediction(x, params, *, tile_n=None):
    """x: (..., hidden) float32 -> (..., 1) float32."""
    *lead, h = x.shape
    n = 1
    for d in lead:
        n *= d
    x2d = x.reshape(n, h)  # f32; the kernel does the bf16 cast (no extra HBM pass)

    # ---- parameter preparation / algebraic folding (small, once per call) ----
    w1 = params["w1"].astype(jnp.bfloat16)                              # (H, H) (in, out)
    b1 = params["b1"].reshape(1, h).astype(jnp.float32)                 # (1, H)
    gw2 = (params["gamma"].reshape(1, h) *
           params["w2"].reshape(1, h)).astype(jnp.float32)              # gamma*W2, (1, H)
    c = (params["beta"].reshape(-1) @ params["w2"].reshape(-1)
         + params["b2"].reshape(()))                                    # beta.W2 + b2
    scal = jnp.stack([jnp.asarray(1.0 / h, jnp.float32),
                      jnp.sum(gw2).astype(jnp.float32),
                      c.astype(jnp.float32)])                           # (3,) SMEM scalars

    # ---- tiling / VMEM policy (per TPU generation) ----
    vmem_cap = (_vmem_capacity_bytes() * 3) // 4    # ~48 MiB v7x, ~96 MiB v5e/v6e
    tn, th = _pick_tiles(n, h, vmem_cap, tile_n)

    hcols = _round_up(h, th)
    if hcols != h:
        # Zero-padded columns: ReLU(x@0 + 0) == 0, so they add nothing to the sums.
        w1 = jnp.pad(w1, ((0, 0), (0, hcols - h)))
        b1 = jnp.pad(b1, ((0, 0), (0, hcols - h)))
        gw2 = jnp.pad(gw2, ((0, 0), (0, hcols - h)))

    grid = (pl.cdiv(n, tn), hcols // th)
    need = _vmem_need_bytes(tn, h, th)
    vmem_limit = int(min(vmem_cap, max(32 * 1024 * 1024, (need * 5) // 4)))

    out2d = pl.pallas_call(
        _next_cand_kernel,
        out_shape=jax.ShapeDtypeStruct((n, 1), jnp.float32),
        grid=grid,
        in_specs=[
            pl.BlockSpec((tn, h), lambda i, j: (i, 0)),      # x row tile (f32, streams over i)
            pl.BlockSpec((h, th), lambda i, j: (0, j)),      # w1 column block (bf16)
            pl.BlockSpec((1, th), lambda i, j: (0, j)),      # b1
            pl.BlockSpec((1, th), lambda i, j: (0, j)),      # gamma*W2
            pl.BlockSpec(memory_space=pltpu.MemorySpace.SMEM),  # [1/H, sum(gw2), c]
        ],
        out_specs=pl.BlockSpec((tn, 1), lambda i, j: (i, 0)),
        scratch_shapes=[
            pltpu.VMEM((tn, h), jnp.bfloat16),   # bf16 copy of the x tile
            pltpu.VMEM((tn, 1), jnp.float32),    # s1
            pltpu.VMEM((tn, 1), jnp.float32),    # s2
            pltpu.VMEM((tn, 1), jnp.float32),    # s3
        ],
        compiler_params=pltpu.CompilerParams(
            dimension_semantics=("parallel", "arbitrary"),
            vmem_limit_bytes=vmem_limit,
        ),
    )(x2d, w1, b1, gw2, scal)

    return out2d.reshape(*lead, 1)


def init_params(key, hidden):
    """Deterministic synthetic parameters matching the module's shapes."""
    k1, k2, k3, k4 = jax.random.split(key, 4)
    scale = 1.0 / jnp.sqrt(jnp.float32(hidden))
    # Stored pre-transposed: (in, out).
    w1 = jax.random.normal(k1, (hidden, hidden), jnp.float32) * scale
    b1 = jax.random.normal(k2, (1, hidden), jnp.float32) * 0.01
    gamma = jnp.ones((1, hidden), jnp.float32)
    beta = jnp.zeros((1, hidden), jnp.float32)
    w2 = jax.random.normal(k3, (hidden, 1), jnp.float32) * scale
    b2 = jax.random.normal(k4, (1, 1), jnp.float32) * 0.01
    return {"w1": w1, "b1": b1, "gamma": gamma, "beta": beta,
            "w2": w2, "b2": b2}


def reference_jax(x, params, *, mxu_dtype=jnp.float32):
    """Plain-JAX reference.  mxu_dtype=bf16 mirrors the kernel's MXU feeds."""
    xq = x.astype(mxu_dtype)
    w1q = params["w1"].astype(mxu_dtype)
    h = jnp.dot(xq, w1q, preferred_element_type=jnp.float32) + params["b1"][0]
    h = jnp.maximum(h, 0.0)
    mean = jnp.mean(h, axis=-1, keepdims=True)
    var = jnp.mean((h - mean) ** 2, axis=-1, keepdims=True)
    hn = (h - mean) / jnp.sqrt(var + LN_EPS)
    hn = hn * params["gamma"][0] + params["beta"][0]
    return hn @ params["w2"] + params["b2"][0]


if __name__ == "__main__":
    batch, seq, hidden = 2, 8, 32
    key = jax.random.PRNGKey(0)
    kx, kp = jax.random.split(key)

    x = jax.random.normal(kx, (batch, seq, hidden), jnp.float32)
    params = init_params(kp, hidden)

    out = next_candidate_prediction(x, params)
    out = jax.block_until_ready(out)
    assert out.shape == (batch, seq, 1), out.shape

    # Tight check against a reference that uses the same bf16 MXU feeds.
    ref_bf16 = reference_jax(x, params, mxu_dtype=jnp.bfloat16)
    assert jnp.allclose(out, ref_bf16, atol=2e-3, rtol=2e-3), (
        f"max abs err (bf16-matched ref) = {jnp.max(jnp.abs(out - ref_bf16))}")

    # Loose sanity check against the full-f32 PyTorch-equivalent math.
    ref_f32 = reference_jax(x, params, mxu_dtype=jnp.float32)
    assert jnp.allclose(out, ref_f32, atol=5e-2, rtol=5e-2), (
        f"max abs err (f32 ref) = {jnp.max(jnp.abs(out - ref_f32))}")

    print("KERNEL_OK")
</pallas_src>

<mosaic_0001>
module attributes {stable_mosaic.version = 11 : i64} {
  func.func @_next_cand_kernel(%arg0: i32, %arg1: i32, %arg2: memref<256x32xf32, #tpu.memory_space<vmem>>, %arg3: memref<32x32xbf16, #tpu.memory_space<vmem>>, %arg4: memref<1x32xf32, #tpu.memory_space<vmem>>, %arg5: memref<1x32xf32, #tpu.memory_space<vmem>>, %arg6: memref<3xf32, #tpu.memory_space<smem>>, %arg7: memref<256x1xf32, #tpu.memory_space<vmem>>, %arg8: memref<256x32xbf16, #tpu.memory_space<vmem>>, %arg9: memref<256x1xf32, #tpu.memory_space<vmem>>, %arg10: memref<256x1xf32, #tpu.memory_space<vmem>>, %arg11: memref<256x1xf32, #tpu.memory_space<vmem>>) attributes {dimension_semantics = [#tpu.dimension_semantics<parallel>, #tpu.dimension_semantics<arbitrary>], iteration_bounds = array<i64: 1, 1>, scalar_prefetch = 0 : i64, scratch_operands = 4 : i64, tpu.core_type = #tpu.core_type<tc>, window_params = [{transform_indices = @transform_0, window_bounds = array<i64: 256, 32>}, {transform_indices = @transform_1, window_bounds = array<i64: 32, 32>}, {transform_indices = @transform_2, window_bounds = array<i64: 1, 32>}, {transform_indices = @transform_3, window_bounds = array<i64: 1, 32>}, {transform_indices = @transform_4, window_bounds = array<i64: 3>}, {transform_indices = @transform_5, window_bounds = array<i64: 256, 1>}]} {
    %c0_i32 = arith.constant 0 : i32
    %0 = arith.cmpi eq, %arg1, %c0_i32 : i32
    %1 = arith.extui %0 : i1 to i32
    %c0_i32_0 = arith.constant 0 : i32
    %2 = arith.cmpi ne, %1, %c0_i32_0 : i32
    scf.if %2 {
      %c0_26 = arith.constant 0 : index
      %c0_27 = arith.constant 0 : index
      %33 = vector.load %arg2[%c0_26, %c0_27] : memref<256x32xf32, #tpu.memory_space<vmem>>, vector<256x32xf32>
      %34 = arith.truncf %33 : vector<256x32xf32> to vector<256x32xbf16>
      %c0_28 = arith.constant 0 : index
      %c0_29 = arith.constant 0 : index
      %35 = vector.load %arg8[%c0_28, %c0_29] : memref<256x32xbf16, #tpu.memory_space<vmem>>, vector<256x32xbf16>
      tpu.vector_store %arg8[%c0_28, %c0_29], %34 {strides = array<i32>} : memref<256x32xbf16, #tpu.memory_space<vmem>>, vector<256x32xbf16>,
      %cst_30 = arith.constant 0.000000e+00 : f32
      %36 = vector.broadcast %cst_30 : f32 to vector<256x1xf32>
      %c0_31 = arith.constant 0 : index
      %c0_32 = arith.constant 0 : index
      %37 = vector.load %arg9[%c0_31, %c0_32] : memref<256x1xf32, #tpu.memory_space<vmem>>, vector<256x1xf32>
      tpu.vector_store %arg9[%c0_31, %c0_32], %36 {strides = array<i32>} : memref<256x1xf32, #tpu.memory_space<vmem>>, vector<256x1xf32>,
      %cst_33 = arith.constant 0.000000e+00 : f32
      %38 = vector.broadcast %cst_33 : f32 to vector<256x1xf32>
      %c0_34 = arith.constant 0 : index
      %c0_35 = arith.constant 0 : index
      %39 = vector.load %arg10[%c0_34, %c0_35] : memref<256x1xf32, #tpu.memory_space<vmem>>, vector<256x1xf32>
      tpu.vector_store %arg10[%c0_34, %c0_35], %38 {strides = array<i32>} : memref<256x1xf32, #tpu.memory_space<vmem>>, vector<256x1xf32>,
      %cst_36 = arith.constant 0.000000e+00 : f32
      %40 = vector.broadcast %cst_36 : f32 to vector<256x1xf32>
      %c0_37 = arith.constant 0 : index
      %c0_38 = arith.constant 0 : index
      %41 = vector.load %arg11[%c0_37, %c0_38] : memref<256x1xf32, #tpu.memory_space<vmem>>, vector<256x1xf32>
      tpu.vector_store %arg11[%c0_37, %c0_38], %40 {strides = array<i32>} : memref<256x1xf32, #tpu.memory_space<vmem>>, vector<256x1xf32>,
    } else {
    }
    %c0 = arith.constant 0 : index
    %c0_1 = arith.constant 0 : index
    %3 = vector.load %arg8[%c0, %c0_1] : memref<256x32xbf16, #tpu.memory_space<vmem>>, vector<256x32xbf16>
    %c0_2 = arith.constant 0 : index
    %c0_3 = arith.constant 0 : index
    %4 = vector.load %arg3[%c0_2, %c0_3] : memref<32x32xbf16, #tpu.memory_space<vmem>>, vector<32x32xbf16>
    %cst = arith.constant dense<0.000000e+00> : vector<256x32xf32>
    %5 = tpu.matmul %3, %4, %cst {dimension_numbers = #tpu.dot_dimension_numbers<[1], [0], [0], [1], [0, 0, 1, 1], [], []>} : vector<256x32xbf16>, vector<32x32xbf16>, vector<256x32xf32> -> vector<256x32xf32>
    %c0_4 = arith.constant 0 : index
    %c0_5 = arith.constant 0 : index
    %6 = vector.load %arg4[%c0_4, %c0_5] : memref<1x32xf32, #tpu.memory_space<vmem>>, vector<1x32xf32>
    %7 = vector.broadcast %6 : vector<1x32xf32> to vector<256x32xf32>
    %8 = arith.addf %5, %7 : vector<256x32xf32>
    %cst_6 = arith.constant 0.000000e+00 : f32
    %9 = vector.broadcast %cst_6 : f32 to vector<256x32xf32>
    %10 = arith.maximumf %8, %9 : vector<256x32xf32>
    %c0_7 = arith.constant 0 : index
    %c0_8 = arith.constant 0 : index
    %11 = vector.load %arg9[%c0_7, %c0_8] : memref<256x1xf32, #tpu.memory_space<vmem>>, vector<256x1xf32>
    %cst_9 = arith.constant dense<0.000000e+00> : vector<256xf32>
    %12 = vector.multi_reduction <add>, %10, %cst_9 [1] : vector<256x32xf32> to vector<256xf32>
    %13 = vector.shape_cast %12 : vector<256xf32> to vector<256x1xf32>
    %14 = arith.addf %11, %13 : vector<256x1xf32>
    %c0_10 = arith.constant 0 : index
    %c0_11 = arith.constant 0 : index
    %15 = vector.load %arg9[%c0_10, %c0_11] : memref<256x1xf32, #tpu.memory_space<vmem>>, vector<256x1xf32>
    tpu.vector_store %arg9[%c0_10, %c0_11], %14 {strides = array<i32>} : memref<256x1xf32, #tpu.memory_space<vmem>>, vector<256x1xf32>,
    %c0_12 = arith.constant 0 : index
    %c0_13 = arith.constant 0 : index
    %16 = vector.load %arg10[%c0_12, %c0_13] : memref<256x1xf32, #tpu.memory_space<vmem>>, vector<256x1xf32>
    %17 = arith.mulf %10, %10 : vector<256x32xf32>
    %cst_14 = arith.constant dense<0.000000e+00> : vector<256xf32>
    %18 = vector.multi_reduction <add>, %17, %cst_14 [1] : vector<256x32xf32> to vector<256xf32>
    %19 = vector.shape_cast %18 : vector<256xf32> to vector<256x1xf32>
    %20 = arith.addf %16, %19 : vector<256x1xf32>
    %c0_15 = arith.constant 0 : index
    %c0_16 = arith.constant 0 : index
    %21 = vector.load %arg10[%c0_15, %c0_16] : memref<256x1xf32, #tpu.memory_space<vmem>>, vector<256x1xf32>
    tpu.vector_store %arg10[%c0_15, %c0_16], %20 {strides = array<i32>} : memref<256x1xf32, #tpu.memory_space<vmem>>, vector<256x1xf32>,
    %c0_17 = arith.constant 0 : index
    %c0_18 = arith.constant 0 : index
    %22 = vector.load %arg11[%c0_17, %c0_18] : memref<256x1xf32, #tpu.memory_space<vmem>>, vector<256x1xf32>
    %c0_19 = arith.constant 0 : index
    %c0_20 = arith.constant 0 : index
    %23 = vector.load %arg5[%c0_19, %c0_20] : memref<1x32xf32, #tpu.memory_space<vmem>>, vector<1x32xf32>
    %24 = vector.broadcast %23 : vector<1x32xf32> to vector<256x32xf32>
    %25 = arith.mulf %10, %24 : vector<256x32xf32>
    %cst_21 = arith.constant dense<0.000000e+00> : vector<256xf32>
    %26 = vector.multi_reduction <add>, %25, %cst_21 [1] : vector<256x32xf32> to vector<256xf32>
    %27 = vector.shape_cast %26 : vector<256xf32> to vector<256x1xf32>
    %28 = arith.addf %22, %27 : vector<256x1xf32>
    %c0_22 = arith.constant 0 : index
    %c0_23 = arith.constant 0 : index
    %29 = vector.load %arg11[%c0_22, %c0_23] : memref<256x1xf32, #tpu.memory_space<vmem>>, vector<256x1xf32>
    tpu.vector_store %arg11[%c0_22, %c0_23], %28 {strides = array<i32>} : memref<256x1xf32, #tpu.memory_space<vmem>>, vector<256x1xf32>,
    %c0_i32_24 = arith.constant 0 : i32
    %30 = arith.cmpi eq, %arg1, %c0_i32_24 : i32
    %31 = arith.extui %30 : i1 to i32
    %c0_i32_25 = arith.constant 0 : i32
    %32 = arith.cmpi ne, %31, %c0_i32_25 : i32
    scf.if %32 {
      %c0_26 = arith.constant 0 : index
      %33 = memref.load %arg6[%c0_26] : memref<3xf32, #tpu.memory_space<smem>>
      %c1 = arith.constant 1 : index
      %34 = memref.load %arg6[%c1] : memref<3xf32, #tpu.memory_space<smem>>
      %c2 = arith.constant 2 : index
      %35 = memref.load %arg6[%c2] : memref<3xf32, #tpu.memory_space<smem>>
      %c0_27 = arith.constant 0 : index
      %c0_28 = arith.constant 0 : index
      %36 = vector.load %arg9[%c0_27, %c0_28] : memref<256x1xf32, #tpu.memory_space<vmem>>, vector<256x1xf32>
      %37 = vector.broadcast %33 : f32 to vector<256x1xf32>
      %38 = arith.mulf %36, %37 : vector<256x1xf32>
      %c0_29 = arith.constant 0 : index
      %c0_30 = arith.constant 0 : index
      %39 = vector.load %arg10[%c0_29, %c0_30] : memref<256x1xf32, #tpu.memory_space<vmem>>, vector<256x1xf32>
      %40 = vector.broadcast %33 : f32 to vector<256x1xf32>
      %41 = arith.mulf %39, %40 : vector<256x1xf32>
      %42 = arith.mulf %38, %38 : vector<256x1xf32>
      %43 = arith.subf %41, %42 : vector<256x1xf32>
      %cst_31 = arith.constant 0.000000e+00 : f32
      %44 = vector.broadcast %cst_31 : f32 to vector<256x1xf32>
      %45 = arith.maximumf %43, %44 : vector<256x1xf32>
      %cst_32 = arith.constant 9.99999996E-13 : f32
      %46 = vector.broadcast %cst_32 : f32 to vector<256x1xf32>
      %47 = arith.addf %45, %46 : vector<256x1xf32>
      %48 = math.rsqrt %47 : vector<256x1xf32>
      %c0_33 = arith.constant 0 : index
      %c0_34 = arith.constant 0 : index
      %49 = vector.load %arg11[%c0_33, %c0_34] : memref<256x1xf32, #tpu.memory_space<vmem>>, vector<256x1xf32>
      %50 = vector.broadcast %34 : f32 to vector<256x1xf32>
      %51 = arith.mulf %38, %50 : vector<256x1xf32>
      %52 = arith.subf %49, %51 : vector<256x1xf32>
      %53 = arith.mulf %48, %52 : vector<256x1xf32>
      %54 = vector.broadcast %35 : f32 to vector<256x1xf32>
      %55 = arith.addf %53, %54 : vector<256x1xf32>
      %c0_35 = arith.constant 0 : index
      %c0_36 = arith.constant 0 : index
      %56 = vector.load %arg7[%c0_35, %c0_36] : memref<256x1xf32, #tpu.memory_space<vmem>>, vector<256x1xf32>
      tpu.vector_store %arg7[%c0_35, %c0_36], %55 {strides = array<i32>} : memref<256x1xf32, #tpu.memory_space<vmem>>, vector<256x1xf32>,
    } else {
    }
    return
  }
  func.func @transform_0(%arg0: i32, %arg1: i32) -> (i32, i32) {
    %c0_i32 = arith.constant 0 : i32
    %c0_i32_0 = arith.constant 0 : i32
    return %arg0, %c0_i32 : i32, i32
  }
  func.func @transform_1(%arg0: i32, %arg1: i32) -> (i32, i32) {
    %c0_i32 = arith.constant 0 : i32
    %c0_i32_0 = arith.constant 0 : i32
    return %c0_i32, %arg1 : i32, i32
  }
  func.func @transform_2(%arg0: i32, %arg1: i32) -> (i32, i32) {
    %c0_i32 = arith.constant 0 : i32
    %c0_i32_0 = arith.constant 0 : i32
    return %c0_i32, %arg1 : i32, i32
  }
  func.func @transform_3(%arg0: i32, %arg1: i32) -> (i32, i32) {
    %c0_i32 = arith.constant 0 : i32
    %c0_i32_0 = arith.constant 0 : i32
    return %c0_i32, %arg1 : i32, i32
  }
  func.func @transform_4(%arg0: i32, %arg1: i32) -> i32 {
    %c0_i32 = arith.constant 0 : i32
    %c0_i32_0 = arith.constant 0 : i32
    return %c0_i32 : i32
  }
  func.func @transform_5(%arg0: i32, %arg1: i32) -> (i32, i32) {
    %c0_i32 = arith.constant 0 : i32
    %c0_i32_0 = arith.constant 0 : i32
    return %arg0, %c0_i32 : i32, i32
  }
}

</mosaic_0001>

<bundles_post_ra>
// kernel: next_candidate_prediction.1
= control target key start
LH: loop header
LB: loop body
LE: loop exit
PB: predicated region body
PF: predicated region fallthrough
CT: control target
= control target key end

     0   :  { %10 = vsyncpa [#allocation7], 0  ;;  %s2826_s0 = inlined_call_operand.vmem [shape: f32[16,32], index: 0, kind: input, shape index: {}]   ;;  %s2827_s1 = inlined_call_operand.vmem [shape: bf16[32,32], index: 1, kind: input, shape index: {}]   ;;  %s2828_s2 = inlined_call_operand.vmem [shape: f32[1,32], index: 2, kind: input, shape index: {}]   ;;  %s2829_s3 = inlined_call_operand.vmem [shape: f32[1,32], index: 3, kind: input, shape index: {}]   ;;  %s2830_s4 = inlined_call_operand.vmem [shape: f32[3], index: 4, kind: input, shape index: {}]   ;;  %s2831_s5 = inlined_call_operand.vmem [shape: f32[16,1], index: 5, kind: output, shape index: {}]  }
   0x1   :  { %s25_s20 = sshll.u32 %s2830_s4, 4  ;;  %s26_s20 = int_to_ptr.vmem [resolvable:$true] %s25_s20 }
   0x2   :  { %s1811_s21 = scalar_lea.vmem %s26_s20, 16  ;;  %p1816_p1 = scmp.lt.s32.totalorder %s26_s20, %s26_s20 }
   0x3   :  { %p1812_p0 = scmp.ne.s32.totalorder %s26_s20, %s1811_s21  ;;  %p1817_p2 = scmp.lt.s32.totalorder %s1811_s21, %s1811_s21 }
   0x5   :  { %p1818_p3 = por %p1817_p2, %p1816_p1 }
   0x7   :  { %p1819_p4 = pnand %p1818_p3, %p1812_p0 }
   0x9   :  { %1822 = shalt.err (!%p1819_p4)
}
   0xa   :  { %s1825_s22 = smov [#allocation6]  }
   0xb   :  { %28 = dma.vmem_to_smem %s26_s20, 16, %s1825_s22, [#allocation7]  }
   0xc   :  { %1823 = dma.done.wait [#allocation7], 16  }
   0xd   :  { %1824 = vsyncadd [#allocation7], 4294967280 }
   0xe   :  { %32 = sfence }
   0xf   :  { %v1745_v0 = vld [vmem:[%s2827_s1] sm:$0xff]   ;;  %v1746_v1 = vld [vmem:[%s2827_s1 + $0x8] sm:$0xff]   ;;  %vm86_vm0 = vcmask 261120   ;;  %v40_v7 = vld [vmem:[%s2826_s0 + $0x10] sm:$0xff]  ;;  %vm103_vm1 = vcmask 7168   ;;  %s2634_s12 = sld [smem:[#allocation6 + $0x1]] }
  0x10   :  { %1703 = vmatprep.subr.bf16.mxu0 %v1745_v0  ;;  %1739 = vmatprep.subr.bf16.mxu1 %v1745_v0  ;;  %v38_v2 = vld [vmem:[%s2826_s0] sm:$0xff]  ;;  %v39_v3 = vld [vmem:[%s2826_s0 + $0x8] sm:$0xff]  ;;  %v41_v8 = vld [vmem:[%s2826_s0 + $0x18] sm:$0xff]  ;;  %s2644_s13 = sld [smem:[#allocation6 + $0x2]] }
  0x11   :  { %v54_v4 = vld [vmem:[%s2826_s0 + $0x80] sm:$0xff]  ;;  %1704 = vmatpush3.bf16.msra.mxu0 %v1745_v0  ;;  %1741 = vmatpush3.bf16.msra.mxu1 %v1745_v0  ;;  %v70_v5 = vpack.c.bf16 %v39_v3, %v38_v2  ;;  %v55_v6 = vld [vmem:[%s2826_s0 + $0x88] sm:$0xff]  ;;  %v71_v10 = vpack.c.bf16 %v41_v8, %v40_v7  ;;  %v56_v11 = vld [vmem:[%s2826_s0 + $0x90] sm:$0xff] }
  0x12   :  { %1705 = vmatprep.subr.bf16.mxu0 %v1746_v1  ;;  %1740 = vmatprep.subr.bf16.mxu1 %v1746_v1  ;;  %v78_v9 = vpack.c.bf16 %v55_v6, %v54_v4  ;;  %v57_v12 = vld [vmem:[%s2826_s0 + $0x98] sm:$0xff]  ;;  %v42_v13 = vld [vmem:[%s2826_s0 + $0x20] sm:$0xff]  ;;  %v43_v15 = vld [vmem:[%s2826_s0 + $0x28] sm:$0xff] }
  0x13   :  { %87 = vst.msk [vmem:[#allocation2] sm:$0xff] %vm86_vm0, %v70_v5  ;;  %v79_v14 = vpack.c.bf16 %v57_v12, %v56_v11  ;;  %v44_v16 = vld [vmem:[%s2826_s0 + $0x30] sm:$0xff]  ;;  %v45_v17 = vld [vmem:[%s2826_s0 + $0x38] sm:$0xff]  ;;  %88 = vst.msk [vmem:[#allocation2 + $0x8] sm:$0xff] %vm86_vm0, %v71_v10  ;;  %v72_v18 = vpack.c.bf16 %v43_v15, %v42_v13 }
  0x14   :  { %95 = vst.msk [vmem:[#allocation2 + $0x40] sm:$0xff] %vm86_vm0, %v78_v9  ;;  %v73_v19 = vpack.c.bf16 %v45_v17, %v44_v16  ;;  %v58_v20 = vld [vmem:[%s2826_s0 + $0xa0] sm:$0xff]  ;;  %v59_v21 = vld [vmem:[%s2826_s0 + $0xa8] sm:$0xff]  ;;  %v60_v22 = vld [vmem:[%s2826_s0 + $0xb0] sm:$0xff] }
  0x15   :  { %1706 = vmatpush3.bf16.msra.mxu0 %v1746_v1  ;;  %1742 = vmatpush3.bf16.msra.mxu1 %v1746_v1  ;;  %96 = vst.msk [vmem:[#allocation2 + $0x48] sm:$0xff] %vm86_vm0, %v79_v14  ;;  %v80_v23 = vpack.c.bf16 %v59_v21, %v58_v20  ;;  %v61_v24 = vld [vmem:[%s2826_s0 + $0xb8] sm:$0xff]  ;;  %v46_v25 = vld [vmem:[%s2826_s0 + $0x40] sm:$0xff]  ;;  %v47_v26 = vld [vmem:[%s2826_s0 + $0x48] sm:$0xff] }
  0x16   :  { %89 = vst.msk [vmem:[#allocation2 + $0x10] sm:$0xff] %vm86_vm0, %v72_v18  ;;  %90 = vst.msk [vmem:[#allocation2 + $0x18] sm:$0xff] %vm86_vm0, %v73_v19  ;;  %v81_v27 = vpack.c.bf16 %v61_v24, %v60_v22  ;;  %v74_v28 = vpack.c.bf16 %v47_v26, %v46_v25  ;;  %v48_v29 = vld [vmem:[%s2826_s0 + $0x50] sm:$0xff]  ;;  %v49_v30 = vld [vmem:[%s2826_s0 + $0x58] sm:$0xff] }
  0x17   :  { %v62_v31 = vld [vmem:[%s2826_s0 + $0xc0] sm:$0xff]  ;;  %97 = vst.msk [vmem:[#allocation2 + $0x50] sm:$0xff] %vm86_vm0, %v80_v23  ;;  %v75_v32 = vpack.c.bf16 %v49_v30, %v48_v29  ;;  %v63_v33 = vld [vmem:[%s2826_s0 + $0xc8] sm:$0xff]  ;;  %v64_v34 = vld [vmem:[%s2826_s0 + $0xd0] sm:$0xff] }
  0x18   :  { %v65_v35 = vld [vmem:[%s2826_s0 + $0xd8] sm:$0xff]  ;;  %98 = vst.msk [vmem:[#allocation2 + $0x58] sm:$0xff] %vm86_vm0, %v81_v27  ;;  %91 = vst.msk [vmem:[#allocation2 + $0x20] sm:$0xff] %vm86_vm0, %v74_v28  ;;  %v82_v36 = vpack.c.bf16 %v63_v33, %v62_v31  ;;  %v50_v38 = vld [vmem:[%s2826_s0 + $0x60] sm:$0xff] }
  0x19   :  { %v83_v37 = vpack.c.bf16 %v65_v35, %v64_v34  ;;  %v51_v39 = vld [vmem:[%s2826_s0 + $0x68] sm:$0xff]  ;;  %v52_v40 = vld [vmem:[%s2826_s0 + $0x70] sm:$0xff]  ;;  %92 = vst.msk [vmem:[#allocation2 + $0x28] sm:$0xff] %vm86_vm0, %v75_v32  ;;  %v53_v42 = vld [vmem:[%s2826_s0 + $0x78] sm:$0xff] }
  0x1a   :  { %v76_v41 = vpack.c.bf16 %v51_v39, %v50_v38  ;;  %v66_v43 = vld [vmem:[%s2826_s0 + $0xe0] sm:$0xff]  ;;  %v67_v44 = vld [vmem:[%s2826_s0 + $0xe8] sm:$0xff]  ;;  %99 = vst.msk [vmem:[#allocation2 + $0x60] sm:$0xff] %vm86_vm0, %v82_v36  ;;  %v77_v46 = vpack.c.bf16 %v53_v42, %v52_v40  ;;  %v68_v48 = vld [vmem:[%s2826_s0 + $0xf0] sm:$0xff] }
  0x1b   :  { %v200_v45 = vld [vmem:[#allocation2] sm:$0xff]  ;;  %100 = vst.msk [vmem:[#allocation2 + $0x68] sm:$0xff] %vm86_vm0, %v83_v37  ;;  %v84_v47 = vpack.c.bf16 %v67_v44, %v66_v43  ;;  %v69_v49 = vld [vmem:[%s2826_s0 + $0xf8] sm:$0xff]  ;;  %v201_v51 = vld [vmem:[#allocation2 + $0x8] sm:$0xff] }
  0x1c   :  { %1707 = vmatprep.mubr.msk.bf16.mxu0 %vm86_vm0, %v200_v45  ;;  %v208_v50 = vld [vmem:[#allocation2 + $0x40] sm:$0xff]  ;;  %93 = vst.msk [vmem:[#allocation2 + $0x30] sm:$0xff] %vm86_vm0, %v76_v41  ;;  %v85_v52 = vpack.c.bf16 %v69_v49, %v68_v48  ;;  %v209_v53 = vld [vmem:[#allocation2 + $0x48] sm:$0xff]  ;;  %94 = vst.msk [vmem:[#allocation2 + $0x38] sm:$0xff] %vm86_vm0, %v77_v46 }
  0x1d   :  { %1723 = vmatprep.mubr.msk.bf16.mxu1 %vm86_vm0, %v208_v50  ;;  %1708 = vmatmul.mubr.msk.bf16.vlgmr.msra.gmra.mrb[0].mxu0 %vm86_vm0, %v201_v51  ;;  %101 = vst.msk [vmem:[#allocation2 + $0x70] sm:$0xff] %vm86_vm0, %v84_v47  ;;  %v202_v54 = vld [vmem:[#allocation2 + $0x10] sm:$0xff]  ;;  %v203_v56 = vld [vmem:[#allocation2 + $0x18] sm:$0xff]  ;;  %v1997_v2 = vld [vmem:[%s2828_s2] ss:$0 sm:$0xff] }
  0x1e   :  { %1724 = vmatmul.mubr.msk.bf16.vlgmr.msra.gmra.mrb[0].mxu1 %vm86_vm0, %v209_v53  ;;  %102 = vst.msk [vmem:[#allocation2 + $0x78] sm:$0xff] %vm86_vm0, %v85_v52  ;;  %1711 = vmatprep.mubr.msk.bf16.mxu0 %vm86_vm0, %v202_v54  ;;  %v210_v55 = vld [vmem:[#allocation2 + $0x50] sm:$0xff]  ;;  %v2042_v49 = vld [vmem:[%s2829_s3] ss:$0 sm:$0xff]  ;;  %s1132_s3 = sld [smem:[#allocation6]] }
  0x1f   :  { %1727 = vmatprep.mubr.msk.bf16.mxu1 %vm86_vm0, %v210_v55  ;;  %v211_v57 = vld [vmem:[#allocation2 + $0x58] sm:$0xff]  ;;  %v204_v58 = vld [vmem:[#allocation2 + $0x20] sm:$0xff] }
  0x20   :  { %v205_v60 = vld [vmem:[#allocation2 + $0x28] sm:$0xff] }
  0x21   :  { %v212_v59 = vld [vmem:[#allocation2 + $0x60] sm:$0xff] }
  0x22   :  { %v213_v61 = vld [vmem:[#allocation2 + $0x68] sm:$0xff] }
  0x23   :  { %v206_v62 = vld [vmem:[#allocation2 + $0x30] sm:$0xff]  ;;  %v207_v0 = vld [vmem:[#allocation2 + $0x38] sm:$0xff] }
  0x24   :  { %v214_v63 = vld [vmem:[#allocation2 + $0x70] sm:$0xff] }
  0x25   :  { %1712 = vmatmul.mubr.msk.bf16.gmra.mrb[4].mxu0 %vm86_vm0, %v203_v56  ;;  %v215_v1 = vld [vmem:[#allocation2 + $0x78] sm:$0xff] }
  0x26   :  { %1728 = vmatmul.mubr.msk.bf16.gmra.mrb[4].mxu1 %vm86_vm0, %v211_v57  ;;  %1715 = vmatprep.mubr.msk.bf16.mxu0 %vm86_vm0, %v204_v58 }
  0x27   :  { %1731 = vmatprep.mubr.msk.bf16.mxu1 %vm86_vm0, %v212_v59 }
  0x2d   :  { %1716 = vmatmul.mubr.msk.bf16.gmra.mrb[8].mxu0 %vm86_vm0, %v205_v60 }
  0x2e   :  { %1732 = vmatmul.mubr.msk.bf16.gmra.mrb[8].mxu1 %vm86_vm0, %v213_v61  ;;  %1719 = vmatprep.mubr.msk.bf16.mxu0 %vm86_vm0, %v206_v62 }
  0x2f   :  { %1735 = vmatprep.mubr.msk.bf16.mxu1 %vm86_vm0, %v214_v63 }
  0x35   :  { %1720 = vmatmul.mubr.msk.bf16.gmra.mrb[12].mxu0 %vm86_vm0, %v207_v0 }
  0x36   :  { %1736 = vmatmul.mubr.msk.bf16.gmra.mrb[12].mxu1 %vm86_vm0, %v215_v1 }
  0xf0   :  { %v1709_v3 = vpop.f32.mrb[0].mxu0 }
  0xf1   :  { %v331_v4 = vadd.f32 %v1709_v3, %v1997_v2  ;;  %v1725_v5 = vpop.f32.mrb[0].mxu1  ;;  %v322_v6 = vpop.f32.mrb[1].mxu0 }
  0xf2   :  { %v395_v7 = vadd.f32 %v1725_v5, %v1997_v2  ;;  %v323_v8 = vadd.f32 %v1997_v2, %v322_v6  ;;  %v386_v9 = vpop.f32.mrb[1].mxu1  ;;  %v1710_v10 = vpop.f32.mrb[2].mxu0 }
  0xf3   :  { %v451_v11 = vmax.f32 %v331_v4, 0.0  ;;  %v334_v12 = vadd.f32 %v1710_v10, %v1997_v2  ;;  %v1726_v13 = vpop.f32.mrb[2].mxu1  ;;  %v325_v14 = vpop.f32.mrb[3].mxu0  ;;  %v387_v21 = vadd.f32 %v1997_v2, %v386_v9 }
  0xf4   :  { %v2003_v15 = vmax.f32 %v395_v7, 0.0  ;;  %v389_v16 = vpop.f32.mrb[3].mxu1  ;;  %v398_v18 = vadd.f32 %v1726_v13, %v1997_v2  ;;  %v2007_v20 = vmax.f32 %v323_v8, 0.0  ;;  %v326_v62 = vadd.f32 %v1997_v2, %v325_v14 }
  0xf5   :  { %v452_v17 = vmax.f32 %v334_v12, 0.0  ;;  %v519_v19 = vsel %vm86_vm0, %v451_v11, 0.0  ;;  %v390_v25 = vadd.f32 %v1997_v2, %v389_v16  ;;  %v2020_v29 = vmax.f32 %v387_v21, 0.0 }
  0xf6   :  { %v567_v22 = vsel %vm86_vm0, %v2003_v15, 0.0  ;;  %520 = vadd.xlane.f32.xlu1 %v519_v19  ;;  %v2014_v24 = vmax.f32 %v398_v18, 0.0  ;;  %v513_v30 = vsel %vm86_vm0, %v2007_v20, 0.0  ;;  %v708_v39 = vmul.f32 %v451_v11, %v451_v11 }
  0xf7   :  { %568 = vadd.xlane.f32.xlu0 %v567_v22  ;;  %v522_v26 = vsel %vm86_vm0, %v452_v17, 0.0  ;;  %v2028_v36 = vmax.f32 %v390_v25, 0.0  ;;  %v561_v38 = vsel %vm86_vm0, %v2020_v29, 0.0  ;;  %v709_v42 = vmul.f32 %v452_v17, %v452_v17 }
  0xf8   :  { %v2012_v23 = vpop.f32.mrb[4].mxu0  ;;  %v570_v37 = vsel %vm86_vm0, %v2014_v24, 0.0  ;;  %v744_v45 = vsel %vm86_vm0, %v708_v39, 0.0  ;;  %v724_v46 = vmul.f32 %v2003_v15, %v2003_v15  ;;  %v725_v54 = vmul.f32 %v2014_v24, %v2014_v24 }
  0xf9   :  { %v338_v27 = vpop.f32.mrb[5].mxu0  ;;  %v2018_v28 = vpop.f32.mrb[4].mxu1  ;;  %v564_v41 = vsel %vm86_vm0, %v2028_v36, 0.0  ;;  %v747_v53 = vsel %vm86_vm0, %v709_v42, 0.0  ;;  %v939_v56 = vmul.f32 %v2042_v49, %v451_v11  ;;  %v940_v0 = vmul.f32 %v2042_v49, %v452_v17 }
  0xfa   :  { %523 = vadd.xlane.f32.xlu1 %v522_v26  ;;  %v2024_v31 = vpop.f32.mrb[6].mxu0  ;;  %v402_v32 = vpop.f32.mrb[5].mxu1  ;;  %v792_v55 = vsel %vm86_vm0, %v724_v46, 0.0  ;;  %v339_v57 = vadd.f32 %v1997_v2, %v338_v27  ;;  %v795_v63 = vsel %vm86_vm0, %v725_v54, 0.0  ;;  %v955_v5 = vmul.f32 %v2042_v49, %v2003_v15 }
  0xfb   :  { %514 = vadd.xlane.f32.xlu0 %v513_v30  ;;  %v341_v33 = vpop.f32.mrb[7].mxu0  ;;  %v2026_v34 = vpop.f32.mrb[6].mxu1  ;;  %v403_v59 = vadd.f32 %v1997_v2, %v402_v32  ;;  %v975_v4 = vsel %vm86_vm0, %v939_v56, 0.0  ;;  %v450_v19 = vmax.f32 %v326_v62, 0.0  ;;  %v978_v21 = vsel %vm86_vm0, %v940_v0, 0.0 }
  0xfc   :  { %v405_v35 = vpop.f32.mrb[7].mxu1  ;;  %v342_v58 = vadd.f32 %v1997_v2, %v341_v33  ;;  %v2059_v6 = vmax.f32 %v339_v57, 0.0  ;;  %v956_v22 = vmul.f32 %v2042_v49, %v2014_v24  ;;  %v1023_v25 = vsel %vm86_vm0, %v955_v5, 0.0 }
  0xfd   :  { %v406_v60 = vadd.f32 %v1997_v2, %v405_v35  ;;  %v2065_v14 = vmax.f32 %v403_v59, 0.0  ;;  %v707_v39 = vmul.f32 %v450_v19, %v450_v19  ;;  %v516_v42 = vsel %vm86_vm0, %v450_v19, 0.0 }
  0xfe   :  { %571 = vadd.xlane.f32.xlu1 %v570_v37  ;;  %v2061_v7 = vmax.f32 %v342_v58, 0.0  ;;  %v2081_v27 = vmul.f32 %v2042_v49, %v2059_v6  ;;  %v350_v0 = vadd.f32 %v2024_v31, %v1997_v2  ;;  %v2165_v5 = vmul.f32 %v2042_v49, %v2020_v29 }
  0xff   :  { %562 = vadd.xlane.f32.xlu0 %v561_v38  ;;  %v2067_v16 = vmax.f32 %v406_v60, 0.0  ;;  %v2101_v37 = vmul.f32 %v2042_v49, %v2065_v14  ;;  %v1026_v38 = vsel %vm86_vm0, %v956_v22, 0.0  ;;  %v937_v60 = vmul.f32 %v2042_v49, %v2007_v20 }
 0x100   :  { %v1717_v40 = vpop.f32.mrb[8].mxu0  ;;  %v2077_v26 = vmul.f32 %v2042_v49, %v2061_v7 }
 0x101   :  { %v354_v43 = vpop.f32.mrb[9].mxu0  ;;  %v1733_v44 = vpop.f32.mrb[8].mxu1  ;;  %v363_v10 = vadd.f32 %v1717_v40, %v1997_v2  ;;  %v2097_v35 = vmul.f32 %v2042_v49, %v2067_v16 }
 0x102   :  { %565 = vadd.xlane.f32.xlu1 %v564_v41  ;;  %v1718_v47 = vpop.f32.mrb[10].mxu0  ;;  %v418_v48 = vpop.f32.mrb[9].mxu1  ;;  %v355_v11 = vadd.f32 %v1997_v2, %v354_v43  ;;  %v2084_v30 = vadd.f32 %v1733_v44, %v1997_v2  ;;  %v706_v43 = vmul.f32 %v2007_v20, %v2007_v20  ;;  %v723_v44 = vmul.f32 %v2028_v36, %v2028_v36 }
 0x103   :  { %745 = vadd.xlane.f32.xlu0 %v744_v45  ;;  %v357_v50 = vpop.f32.mrb[11].mxu0  ;;  %v1734_v51 = vpop.f32.mrb[10].mxu1  ;;  %v366_v17 = vadd.f32 %v1718_v47, %v1997_v2  ;;  %v2087_v32 = vadd.f32 %v1997_v2, %v418_v48  ;;  %v2104_v40 = vmax.f32 %v363_v10, 0.0  ;;  %v741_v45 = vsel %vm86_vm0, %v707_v39, 0.0 }
 0x104   :  { %v421_v52 = vpop.f32.mrb[11].mxu1  ;;  %v358_v15 = vadd.f32 %v1997_v2, %v357_v50  ;;  %v2090_v24 = vadd.f32 %v1734_v51, %v1997_v2  ;;  %v738_v48 = vsel %vm86_vm0, %v706_v43, 0.0  ;;  %v722_v50 = vmul.f32 %v2020_v29, %v2020_v29 }
 0x105   :  { %v2093_v33 = vadd.f32 %v1997_v2, %v421_v52  ;;  %v2106_v41 = vmax.f32 %v366_v17, 0.0  ;;  %v2120_v47 = vmul.f32 %v2042_v49, %v2104_v40  ;;  %v789_v51 = vsel %vm86_vm0, %v723_v44, 0.0 }
 0x106   :  { %748 = vadd.xlane.f32.xlu1 %v747_v53  ;;  %v938_v52 = vmul.f32 %v2042_v49, %v450_v19  ;;  %v2133_v56 = vmax.f32 %v358_v15, 0.0  ;;  %v786_v59 = vsel %vm86_vm0, %v722_v50, 0.0  ;;  %v2182_v29 = vadd.f32 %v2018_v28, %v1997_v2 }
 0x107   :  { %793 = vadd.xlane.f32.xlu0 %v792_v55  ;;  %v2116_v46 = vmul.f32 %v2042_v49, %v2106_v41  ;;  %v2131_v55 = vmax.f32 %v355_v11, 0.0  ;;  %v2186_v11 = vmax.f32 %v350_v0, 0.0  ;;  %v1017_v28 = vsel %vm86_vm0, %v2165_v5, 0.0 }
 0x108   :  { %v1721_v61 = vpop.f32.mrb[12].mxu0  ;;  %v2392_v17 = vmax.f32 %v2093_v33, 0.0  ;;  %v2395_v15 = vmax.f32 %v2090_v24, 0.0  ;;  %v471_v22 = vmax.f32 %v2182_v29, 0.0 }
 0x109   :  { %v370_v1 = vpop.f32.mrb[13].mxu0  ;;  %v1737_v3 = vpop.f32.mrb[12].mxu1  ;;  %v379_v53 = vadd.f32 %v1721_v61, %v1997_v2  ;;  %v2173_v31 = vmul.f32 %v2042_v49, %v2131_v55  ;;  %v534_v24 = vsel %vm86_vm0, %v2186_v11, 0.0  ;;  %v713_v0 = vmul.f32 %v2186_v11, %v2186_v11 }
 0x10a   :  { %796 = vadd.xlane.f32.xlu1 %v795_v63  ;;  %v1722_v8 = vpop.f32.mrb[14].mxu0  ;;  %v434_v9 = vpop.f32.mrb[13].mxu1  ;;  %v2129_v54 = vadd.f32 %v1997_v2, %v370_v1  ;;  %v2143_v61 = vadd.f32 %v1737_v3, %v1997_v2  ;;  %v347_v63 = vadd.f32 %v2012_v23, %v1997_v2  ;;  %v972_v1 = vsel %vm86_vm0, %v938_v52, 0.0 }
 0x10b   :  { %976 = vadd.xlane.f32.xlu0 %v975_v4  ;;  %v373_v12 = vpop.f32.mrb[15].mxu0  ;;  %v1738_v13 = vpop.f32.mrb[14].mxu1  ;;  %v382_v57 = vadd.f32 %v1722_v8, %v1997_v2  ;;  %v2146_v62 = vadd.f32 %v1997_v2, %v434_v9  ;;  %v2161_v3 = vmul.f32 %v2042_v49, %v2028_v36  ;;  %v2169_v23 = vmul.f32 %v2042_v49, %v2133_v56 }
 0x10c   :  { %v437_v18 = vpop.f32.mrb[15].mxu1  ;;  %v2137_v58 = vadd.f32 %v1997_v2, %v373_v12  ;;  %v2154_v4 = vadd.f32 %v1738_v13, %v1997_v2  ;;  %v969_v8 = vsel %vm86_vm0, %v937_v60, 0.0  ;;  %v2176_v9 = vmax.f32 %v379_v53, 0.0 }
 0x10d   :  { %v2157_v20 = vadd.f32 %v1997_v2, %v437_v18  ;;  %v2178_v10 = vmax.f32 %v382_v57, 0.0  ;;  %v2184_v36 = vmax.f32 %v347_v63, 0.0  ;;  %v2190_v12 = vadd.f32 %v2026_v34, %v1997_v2 }
 0x10e   :  { %979 = vadd.xlane.f32.xlu1 %v978_v21  ;;  %v1826_v13 = vmov 0.0   ;;  %v1020_v2 = vsel %vm86_vm0, %v2161_v3, 0.0  ;;  %v2389_v34 = vmax.f32 %v2087_v32, 0.0  ;;  %v2398_v18 = vmax.f32 %v2129_v54, 0.0 }
 0x10f   :  { %1024 = vadd.xlane.f32.xlu0 %v1023_v25  ;;  %122 = vst.msk [vmem:[#allocation3 + $0x90] sm:$0xff] %vm103_vm1, %v1826_v13  ;;  %104 = vst.msk [vmem:[#allocation3] sm:$0xff] %vm103_vm1, %v1826_v13  ;;  %v2402_v19 = vmul.f32 %v2042_v49, %v2178_v10  ;;  %v2406_v21 = vmul.f32 %v2042_v49, %v2176_v9  ;;  %v2410_v25 = vmax.f32 %v2137_v58, 0.0  ;;  %v472_v32 = vmax.f32 %v2190_v12, 0.0 }
 0x110   :  { %105 = vst.msk [vmem:[#allocation3 + $0x8] sm:$0xff] %vm103_vm1, %v1826_v13  ;;  %106 = vst.msk [vmem:[#allocation3 + $0x10] sm:$0xff] %vm103_vm1, %v1826_v13  ;;  %v531_v33 = vsel %vm86_vm0, %v2184_v36, 0.0  ;;  %v2421_v39 = vmax.f32 %v2146_v62, 0.0  ;;  %v2427_v43 = vmax.f32 %v2157_v20, 0.0  ;;  %v2431_v44 = vmul.f32 %v2042_v49, %v2392_v17 }
 0x111   :  { %107 = vst.msk [vmem:[#allocation3 + $0x18] sm:$0xff] %vm103_vm1, %v1826_v13  ;;  %108 = vst.msk [vmem:[#allocation3 + $0x20] sm:$0xff] %vm103_vm1, %v1826_v13  ;;  %v2446_v50 = vmul.f32 %v2042_v49, %v2398_v18  ;;  %v582_v53 = vsel %vm86_vm0, %v472_v32, 0.0  ;;  %v525_v62 = vsel %vm86_vm0, %v2059_v6, 0.0  ;;  %v576_v63 = vsel %vm86_vm0, %v2067_v16, 0.0 }
 0x112   :  { %1027 = vadd.xlane.f32.xlu1 %v1026_v38  ;;  %109 = vst.msk [vmem:[#allocation3 + $0x28] sm:$0xff] %vm103_vm1, %v1826_v13  ;;  %110 = vst.msk [vmem:[#allocation3 + $0x30] sm:$0xff] %vm103_vm1, %v1826_v13  ;;  %v2418_v38 = vmax.f32 %v2084_v30, 0.0  ;;  %v2438_v30 = vmul.f32 %v2042_v49, %v2389_v34  ;;  %v2459_v54 = vmul.f32 %v2042_v49, %v2427_v43  ;;  %v759_v20 = vsel %vm86_vm0, %v713_v0, 0.0 }
 0x113   :  { %517 = vadd.xlane.f32.xlu0 %v516_v42  ;;  %111 = vst.msk [vmem:[#allocation3 + $0x38] sm:$0xff] %vm103_vm1, %v1826_v13  ;;  %112 = vst.msk [vmem:[#allocation3 + $0x40] sm:$0xff] %vm103_vm1, %v1826_v13  ;;  %v2424_v42 = vmax.f32 %v2154_v4, 0.0  ;;  %v2463_v57 = vmul.f32 %v2042_v49, %v2421_v39  ;;  %v712_v4 = vmul.f32 %v2184_v36, %v2184_v36  ;;  %v1032_v0 = vsel %vm86_vm0, %v2097_v35, 0.0 }
 0x114   :  { %113 = vst.msk [vmem:[#allocation3 + $0x48] sm:$0xff] %vm103_vm1, %v1826_v13  ;;  %114 = vst.msk [vmem:[#allocation3 + $0x50] sm:$0xff] %vm103_vm1, %v1826_v13  ;;  %v2454_v52 = vmul.f32 %v2042_v49, %v2418_v38  ;;  %v729_v3 = vmul.f32 %v472_v32, %v472_v32  ;;  %v944_v12 = vmul.f32 %v2042_v49, %v2186_v11  ;;  %v591_v35 = vsel %vm86_vm0, %v2418_v38, 0.0 }
 0x115   :  { %115 = vst.msk [vmem:[#allocation3 + $0x58] sm:$0xff] %vm103_vm1, %v1826_v13  ;;  %116 = vst.msk [vmem:[#allocation3 + $0x60] sm:$0xff] %vm103_vm1, %v1826_v13  ;;  %v2467_v58 = vmul.f32 %v2042_v49, %v2424_v42  ;;  %v756_v5 = vsel %vm86_vm0, %v712_v4, 0.0  ;;  %v711_v11 = vmul.f32 %v2061_v7, %v2061_v7  ;;  %v537_v4 = vsel %vm86_vm0, %v2131_v55, 0.0 }
 0x116   :  { %742 = vadd.xlane.f32.xlu1 %v741_v45  ;;  %117 = vst.msk [vmem:[#allocation3 + $0x68] sm:$0xff] %vm103_vm1, %v1826_v13  ;;  %118 = vst.msk [vmem:[#allocation3 + $0x70] sm:$0xff] %vm103_vm1, %v1826_v13  ;;  %v2434_v45 = vmax.f32 %v2143_v61, 0.0  ;;  %v528_v61 = vsel %vm86_vm0, %v2061_v7, 0.0  ;;  %v807_v29 = vsel %vm86_vm0, %v729_v3, 0.0  ;;  %v717_v3 = vmul.f32 %v2106_v41, %v2106_v41 }
 0x117   :  { %739 = vadd.xlane.f32.xlu0 %v738_v48  ;;  %119 = vst.msk [vmem:[#allocation3 + $0x78] sm:$0xff] %vm103_vm1, %v1826_v13  ;;  %120 = vst.msk [vmem:[#allocation3 + $0x80] sm:$0xff] %vm103_vm1, %v1826_v13  ;;  %v2442_v48 = vmul.f32 %v2042_v49, %v2395_v15 }
 0x118   :  { %121 = vst.msk [vmem:[#allocation3 + $0x88] sm:$0xff] %vm103_vm1, %v1826_v13  ;;  %123 = vst.msk [vmem:[#allocation3 + $0x98] sm:$0xff] %vm103_vm1, %v1826_v13  ;;  %v2472_v60 = vmul.f32 %v2042_v49, %v2434_v45 }
 0x119   :  { %124 = vst.msk [vmem:[#allocation3 + $0xa0] sm:$0xff] %vm103_vm1, %v1826_v13  ;;  %125 = vst.msk [vmem:[#allocation3 + $0xa8] sm:$0xff] %vm103_vm1, %v1826_v13 }
 0x11a   :  { %790 = vadd.xlane.f32.xlu1 %v789_v51  ;;  %126 = vst.msk [vmem:[#allocation3 + $0xb0] sm:$0xff] %vm103_vm1, %v1826_v13  ;;  %127 = vst.msk [vmem:[#allocation3 + $0xb8] sm:$0xff] %vm103_vm1, %v1826_v13  ;;  %v2450_v51 = vmul.f32 %v2042_v49, %v2410_v25 }
 0x11b   :  { %787 = vadd.xlane.f32.xlu0 %v786_v59  ;;  %128 = vst.msk [vmem:[#allocation3 + $0xc0] sm:$0xff] %vm103_vm1, %v1826_v13  ;;  %129 = vst.msk [vmem:[#allocation3 + $0xc8] sm:$0xff] %vm103_vm1, %v1826_v13  ;;  %v579_v59 = vsel %vm86_vm0, %v471_v22, 0.0 }
 0x11c   :  { %130 = vst.msk [vmem:[#allocation3 + $0xd0] sm:$0xff] %vm103_vm1, %v1826_v13  ;;  %131 = vst.msk [vmem:[#allocation3 + $0xd8] sm:$0xff] %vm103_vm1, %v1826_v13 }
 0x11d   :  { %132 = vst.msk [vmem:[#allocation3 + $0xe0] sm:$0xff] %vm103_vm1, %v1826_v13  ;;  %133 = vst.msk [vmem:[#allocation3 + $0xe8] sm:$0xff] %vm103_vm1, %v1826_v13 }
 0x11e   :  { %973 = vadd.xlane.f32.xlu1 %v972_v1  ;;  %134 = vst.msk [vmem:[#allocation3 + $0xf0] sm:$0xff] %vm103_vm1, %v1826_v13  ;;  %135 = vst.msk [vmem:[#allocation3 + $0xf8] sm:$0xff] %vm103_vm1, %v1826_v13  ;;  %v573_v1 = vsel %vm86_vm0, %v2065_v14, 0.0 }
 0x11f   :  { %970 = vadd.xlane.f32.xlu0 %v969_v8  ;;  %136 = vst.msk [vmem:[#allocation4] sm:$0xff] %vm103_vm1, %v1826_v13  ;;  %137 = vst.msk [vmem:[#allocation4 + $0x8] sm:$0xff] %vm103_vm1, %v1826_v13  ;;  %v728_v8 = vmul.f32 %v471_v22, %v471_v22 }
 0x120   :  { %138 = vst.msk [vmem:[#allocation4 + $0x10] sm:$0xff] %vm103_vm1, %v1826_v13  ;;  %139 = vst.msk [vmem:[#allocation4 + $0x18] sm:$0xff] %vm103_vm1, %v1826_v13 }
 0x121   :  { %140 = vst.msk [vmem:[#allocation4 + $0x20] sm:$0xff] %vm103_vm1, %v1826_v13  ;;  %141 = vst.msk [vmem:[#allocation4 + $0x28] sm:$0xff] %vm103_vm1, %v1826_v13 }
 0x122   :  { %142 = vst.msk [vmem:[#allocation4 + $0x30] sm:$0xff] %vm103_vm1, %v1826_v13  ;;  %143 = vst.msk [vmem:[#allocation4 + $0x38] sm:$0xff] %vm103_vm1, %v1826_v13  ;;  %1021 = vadd.xlane.f32.xlu1 %v1020_v2  ;;  %v943_v2 = vmul.f32 %v2042_v49, %v2184_v36  ;;  %v710_v36 = vmul.f32 %v2059_v6, %v2059_v6  ;;  %v984_v6 = vsel %vm86_vm0, %v2077_v26, 0.0  ;;  %v543_v26 = vsel %vm86_vm0, %v2104_v40, 0.0 }
 0x123   :  { %144 = vst.msk [vmem:[#allocation4 + $0x40] sm:$0xff] %vm103_vm1, %v1826_v13  ;;  %145 = vst.msk [vmem:[#allocation4 + $0x48] sm:$0xff] %vm103_vm1, %v1826_v13  ;;  %1018 = vadd.xlane.f32.xlu0 %v1017_v28  ;;  %v990_v28 = vsel %vm86_vm0, %v944_v12, 0.0  ;;  %v733_v12 = vmul.f32 %v2395_v15, %v2395_v15 }
 0x124   :  { %146 = vst.msk [vmem:[#allocation4 + $0x50] sm:$0xff] %vm103_vm1, %v1826_v13  ;;  %147 = vst.msk [vmem:[#allocation4 + $0x58] sm:$0xff] %vm103_vm1, %v1826_v13 }
 0x125   :  { %148 = vst.msk [vmem:[#allocation4 + $0x60] sm:$0xff] %vm103_vm1, %v1826_v13  ;;  %149 = vst.msk [vmem:[#allocation4 + $0x68] sm:$0xff] %vm103_vm1, %v1826_v13 }
 0x126   :  { %150 = vst.msk [vmem:[#allocation4 + $0x70] sm:$0xff] %vm103_vm1, %v1826_v13  ;;  %151 = vst.msk [vmem:[#allocation4 + $0x78] sm:$0xff] %vm103_vm1, %v1826_v13  ;;  %535 = vadd.xlane.f32.xlu1 %v534_v24  ;;  %v960_v24 = vmul.f32 %v2042_v49, %v472_v32  ;;  %v753_v32 = vsel %vm86_vm0, %v711_v11, 0.0  ;;  %v558_v11 = vsel %vm86_vm0, %v2178_v10, 0.0 }
 0x127   :  { %152 = vst.msk [vmem:[#allocation4 + $0x80] sm:$0xff] %vm103_vm1, %v1826_v13  ;;  %153 = vst.msk [vmem:[#allocation4 + $0x88] sm:$0xff] %vm103_vm1, %v1826_v13  ;;  %532 = vadd.xlane.f32.xlu0 %v531_v33  ;;  %v987_v33 = vsel %vm86_vm0, %v943_v2, 0.0  ;;  %v732_v2 = vmul.f32 %v2418_v38, %v2418_v38  ;;  %v714_v38 = vmul.f32 %v2131_v55, %v2131_v55  ;;  %v996_v55 = vsel %vm86_vm0, %v2169_v23, 0.0 }
 0x128   :  { %154 = vst.msk [vmem:[#allocation4 + $0x90] sm:$0xff] %vm103_vm1, %v1826_v13  ;;  %155 = vst.msk [vmem:[#allocation4 + $0x98] sm:$0xff] %vm103_vm1, %v1826_v13  ;;  %v603_v23 = vsel %vm86_vm0, %v2434_v45, 0.0 }
 0x129   :  { %156 = vst.msk [vmem:[#allocation4 + $0xa0] sm:$0xff] %vm103_vm1, %v1826_v13  ;;  %157 = vst.msk [vmem:[#allocation4 + $0xa8] sm:$0xff] %vm103_vm1, %v1826_v13 }
 0x12a   :  { %158 = vst.msk [vmem:[#allocation4 + $0xb0] sm:$0xff] %vm103_vm1, %v1826_v13  ;;  %159 = vst.msk [vmem:[#allocation4 + $0xb8] sm:$0xff] %vm103_vm1, %v1826_v13  ;;  %583 = vadd.xlane.f32.xlu1 %v582_v53  ;;  %v959_v53 = vmul.f32 %v2042_v49, %v471_v22  ;;  %v750_v49 = vsel %vm86_vm0, %v710_v36, 0.0  ;;  %v726_v22 = vmul.f32 %v2065_v14, %v2065_v14  ;;  %v1029_v14 = vsel %vm86_vm0, %v2101_v37, 0.0  ;;  %v483_v36 = vld [vmem:[#allocation3 + $0x10] sm:$0xff] }
 0x12b   :  { %160 = vst.msk [vmem:[#allocation4 + $0xc0] sm:$0xff] %vm103_vm1, %v1826_v13  ;;  %161 = vst.msk [vmem:[#allocation4 + $0xc8] sm:$0xff] %vm103_vm1, %v1826_v13  ;;  %580 = vadd.xlane.f32.xlu0 %v579_v59  ;;  %v1038_v59 = vsel %vm86_vm0, %v960_v24, 0.0  ;;  %v540_v37 = vsel %vm86_vm0, %v2133_v56, 0.0  ;;  %v715_v24 = vmul.f32 %v2133_v56, %v2133_v56 }
 0x12c   :  { %162 = vst.msk [vmem:[#allocation4 + $0xd0] sm:$0xff] %vm103_vm1, %v1826_v13  ;;  %163 = vst.msk [vmem:[#allocation4 + $0xd8] sm:$0xff] %vm103_vm1, %v1826_v13 }
 0x12d   :  { %164 = vst.msk [vmem:[#allocation4 + $0xe0] sm:$0xff] %vm103_vm1, %v1826_v13  ;;  %165 = vst.msk [vmem:[#allocation4 + $0xe8] sm:$0xff] %vm103_vm1, %v1826_v13 }
 0x12e   :  { %166 = vst.msk [vmem:[#allocation4 + $0xf0] sm:$0xff] %vm103_vm1, %v1826_v13  ;;  %167 = vst.msk [vmem:[#allocation4 + $0xf8] sm:$0xff] %vm103_vm1, %v1826_v13  ;;  %529 = vadd.xlane.f32.xlu1 %v528_v61  ;;  %v1035_v61 = vsel %vm86_vm0, %v959_v53, 0.0  ;;  %v731_v53 = vmul.f32 %v2392_v17, %v2392_v17 }
 0x12f   :  { %168 = vst.msk [vmem:[#allocation5] sm:$0xff] %vm103_vm1, %v1826_v13  ;;  %169 = vst.msk [vmem:[#allocation5 + $0x8] sm:$0xff] %vm103_vm1, %v1826_v13  ;;  %526 = vadd.xlane.f32.xlu0 %v525_v62  ;;  %v727_v62 = vmul.f32 %v2067_v16, %v2067_v16  ;;  %v981_v16 = vsel %vm86_vm0, %v2081_v27, 0.0  ;;  %v594_v27 = vsel %vm86_vm0, %v2395_v15, 0.0  ;;  %v999_v15 = vsel %vm86_vm0, %v2120_v47, 0.0 }
 0x130   :  { %170 = vst.msk [vmem:[#allocation5 + $0x10] sm:$0xff] %vm103_vm1, %v1826_v13  ;;  %171 = vst.msk [vmem:[#allocation5 + $0x18] sm:$0xff] %vm103_vm1, %v1826_v13  ;;  %v813_v56 = vsel %vm86_vm0, %v731_v53, 0.0  ;;  %v677_v53 = vld [vmem:[#allocation4 + $0x18] sm:$0xff] }
 0x131   :  { %172 = vst.msk [vmem:[#allocation5 + $0x20] sm:$0xff] %vm103_vm1, %v1826_v13  ;;  %173 = vst.msk [vmem:[#allocation5 + $0x28] sm:$0xff] %vm103_vm1, %v1826_v13  ;;  %v801_v7 = vsel %vm86_vm0, %v727_v62, 0.0 }
 0x132   :  { %174 = vst.msk [vmem:[#allocation5 + $0x30] sm:$0xff] %vm103_vm1, %v1826_v13  ;;  %175 = vst.msk [vmem:[#allocation5 + $0x38] sm:$0xff] %vm103_vm1, %v1826_v13  ;;  %577 = vadd.xlane.f32.xlu1 %v576_v63  ;;  %v798_v63 = vsel %vm86_vm0, %v726_v22, 0.0 }
 0x133   :  { %176 = vst.msk [vmem:[#allocation5 + $0x40] sm:$0xff] %vm103_vm1, %v1826_v13  ;;  %177 = vst.msk [vmem:[#allocation5 + $0x48] sm:$0xff] %vm103_vm1, %v1826_v13  ;;  %574 = vadd.xlane.f32.xlu0 %v573_v1  ;;  %v546_v1 = vsel %vm86_vm0, %v2106_v41, 0.0  ;;  %v819_v41 = vsel %vm86_vm0, %v733_v12, 0.0 }
 0x134   :  { %178 = vst.msk [vmem:[#allocation5 + $0x50] sm:$0xff] %vm103_vm1, %v1826_v13  ;;  %179 = vst.msk [vmem:[#allocation5 + $0x58] sm:$0xff] %vm103_vm1, %v1826_v13 }
 0x135   :  { %180 = vst.msk [vmem:[#allocation5 + $0x60] sm:$0xff] %vm103_vm1, %v1826_v13  ;;  %181 = vst.msk [vmem:[#allocation5 + $0x68] sm:$0xff] %vm103_vm1, %v1826_v13 }
 0x136   :  { %182 = vst.msk [vmem:[#allocation5 + $0x70] sm:$0xff] %vm103_vm1, %v1826_v13  ;;  %183 = vst.msk [vmem:[#allocation5 + $0x78] sm:$0xff] %vm103_vm1, %v1826_v13  ;;  %760 = vadd.xlane.f32.xlu1 %v759_v20  ;;  %v588_v20 = vsel %vm86_vm0, %v2392_v17, 0.0  ;;  %v993_v17 = vsel %vm86_vm0, %v2173_v31, 0.0 }
 0x137   :  { %184 = vst.msk [vmem:[#allocation5 + $0x80] sm:$0xff] %vm103_vm1, %v1826_v13  ;;  %185 = vst.msk [vmem:[#allocation5 + $0x88] sm:$0xff] %vm103_vm1, %v1826_v13  ;;  %757 = vadd.xlane.f32.xlu0 %v756_v5  ;;  %v585_v5 = vsel %vm86_vm0, %v2389_v34, 0.0 }
 0x138   :  { %186 = vst.msk [vmem:[#allocation5 + $0x90] sm:$0xff] %vm103_vm1, %v1826_v13  ;;  %187 = vst.msk [vmem:[#allocation5 + $0x98] sm:$0xff] %vm103_vm1, %v1826_v13 }
 0x139   :  { %188 = vst.msk [vmem:[#allocation5 + $0xa0] sm:$0xff] %vm103_vm1, %v1826_v13  ;;  %189 = vst.msk [vmem:[#allocation5 + $0xa8] sm:$0xff] %vm103_vm1, %v1826_v13 }
 0x13a   :  { %190 = vst.msk [vmem:[#allocation5 + $0xb0] sm:$0xff] %vm103_vm1, %v1826_v13  ;;  %191 = vst.msk [vmem:[#allocation5 + $0xb8] sm:$0xff] %vm103_vm1, %v1826_v13  ;;  %808 = vadd.xlane.f32.xlu1 %v807_v29  ;;  %v771_v29 = vsel %vm86_vm0, %v717_v3, 0.0  ;;  %v720_v3 = vmul.f32 %v2176_v9, %v2176_v9 }
 0x13b   :  { %192 = vst.msk [vmem:[#allocation5 + $0xc0] sm:$0xff] %vm103_vm1, %v1826_v13  ;;  %193 = vst.msk [vmem:[#allocation5 + $0xc8] sm:$0xff] %vm103_vm1, %v1826_v13 }
 0x13c   :  { %194 = vst.msk [vmem:[#allocation5 + $0xd0] sm:$0xff] %vm103_vm1, %v1826_v13  ;;  %195 = vst.msk [vmem:[#allocation5 + $0xd8] sm:$0xff] %vm103_vm1, %v1826_v13 }
 0x13d   :  { %196 = vst.msk [vmem:[#allocation5 + $0xe0] sm:$0xff] %vm103_vm1, %v1826_v13  ;;  %197 = vst.msk [vmem:[#allocation5 + $0xe8] sm:$0xff] %vm103_vm1, %v1826_v13 }
 0x13e   :  { %198 = vst.msk [vmem:[#allocation5 + $0xf0] sm:$0xff] %vm103_vm1, %v1826_v13  ;;  %199 = vst.msk [vmem:[#allocation5 + $0xf8] sm:$0xff] %vm103_vm1, %v1826_v13  ;;  %v804_v13 = vsel %vm86_vm0, %v728_v8, 0.0  ;;  %991 = vadd.xlane.f32.xlu1 %v990_v28  ;;  %v716_v8 = vmul.f32 %v2104_v40, %v2104_v40  ;;  %v816_v28 = vsel %vm86_vm0, %v732_v2, 0.0  ;;  %v1002_v40 = vsel %vm86_vm0, %v2116_v46, 0.0 }
 0x13f   :  { %805 = vadd.xlane.f32.xlu0 %v804_v13  ;;  %v730_v46 = vmul.f32 %v2389_v34, %v2389_v34  ;;  %v555_v34 = vsel %vm86_vm0, %v2176_v9, 0.0  ;;  %v737_v2 = vmul.f32 %v2424_v42, %v2424_v42  ;;  %v676_v9 = vld [vmem:[#allocation4 + $0x10] sm:$0xff] }
 0x140   :  { %v768_v13 = vsel %vm86_vm0, %v716_v8, 0.0 }
 0x141   :  { %v810_v47 = vsel %vm86_vm0, %v730_v46, 0.0  ;;  %v2604_v46 = vstv %s1132_s3 }
 0x142   :  { %1039 = vadd.xlane.f32.xlu1 %v1038_v59  ;;  %v762_v59 = vsel %vm86_vm0, %v714_v38, 0.0 }
 0x143   :  { %988 = vadd.xlane.f32.xlu0 %v987_v33  ;;  %v765_v33 = vsel %vm86_vm0, %v715_v24, 0.0 }
 0x146   :  { %754 = vadd.xlane.f32.xlu1 %v753_v32  ;;  %v499_v32 = vld [vmem:[#allocation3 + $0x90] sm:$0xff] }
 0x147   :  { %1036 = vadd.xlane.f32.xlu0 %v1035_v61  ;;  %v606_v61 = vsel %vm86_vm0, %v2424_v42, 0.0 }
 0x14a   :  { %802 = vadd.xlane.f32.xlu1 %v801_v7  ;;  %v552_v7 = vsel %vm86_vm0, %v2410_v25, 0.0 }
 0x14b   :  { %751 = vadd.xlane.f32.xlu0 %v750_v49 }
 0x14e   :  { %985 = vadd.xlane.f32.xlu1 %v984_v6  ;;  %v549_v6 = vsel %vm86_vm0, %v2398_v18, 0.0 }
 0x14f   :  { %799 = vadd.xlane.f32.xlu0 %v798_v63  ;;  %v484_v63 = vld [vmem:[#allocation3 + $0x18] sm:$0xff] }
 0x152   :  { %1033 = vadd.xlane.f32.xlu1 %v1032_v0 }
 0x153   :  { %982 = vadd.xlane.f32.xlu0 %v981_v16  ;;  %v481_v16 = vld [vmem:[#allocation3] sm:$0xff] }
 0x156   :  { %547 = vadd.xlane.f32.xlu1 %v546_v1 }
 0x157   :  { %1030 = vadd.xlane.f32.xlu0 %v1029_v14 }
 0x15a   :  { %595 = vadd.xlane.f32.xlu1 %v594_v27  ;;  %v600_v27 = vsel %vm86_vm0, %v2427_v43, 0.0 }
 0x15b   :  { %544 = vadd.xlane.f32.xlu0 %v543_v26 }
 0x15e   :  { %541 = vadd.xlane.f32.xlu1 %v540_v37  ;;  %v721_v37 = vmul.f32 %v2178_v10, %v2178_v10 }
 0x15f   :  { %592 = vadd.xlane.f32.xlu0 %v591_v35  ;;  %v500_v35 = vld [vmem:[#allocation3 + $0x98] sm:$0xff] }
 0x160   :  { %v783_v10 = vsel %vm86_vm0, %v721_v37, 0.0 }
 0x162   :  { %589 = vadd.xlane.f32.xlu1 %v588_v20  ;;  %v497_v20 = vld [vmem:[#allocation3 + $0x80] sm:$0xff] }
 0x163   :  { %538 = vadd.xlane.f32.xlu0 %v537_v4  ;;  %v597_v4 = vsel %vm86_vm0, %v2421_v39, 0.0 }
 0x166   :  { %772 = vadd.xlane.f32.xlu1 %v771_v29 }
 0x167   :  { %586 = vadd.xlane.f32.xlu0 %v585_v5 }
 0x16a   :  { %820 = vadd.xlane.f32.xlu1 %v819_v41  ;;  %v780_v41 = vsel %vm86_vm0, %v720_v3, 0.0 }
 0x16b   :  { %769 = vadd.xlane.f32.xlu0 %v768_v13  ;;  %v498_v13 = vld [vmem:[#allocation3 + $0x88] sm:$0xff] }
 0x16e   :  { %1003 = vadd.xlane.f32.xlu1 %v1002_v40 }
 0x16f   :  { %817 = vadd.xlane.f32.xlu0 %v816_v28  ;;  %v736_v28 = vmul.f32 %v2434_v45, %v2434_v45 }
 0x171   :  { %v828_v42 = vsel %vm86_vm0, %v736_v28, 0.0 }
 0x172   :  { %766 = vadd.xlane.f32.xlu1 %v765_v33  ;;  %v831_v33 = vsel %vm86_vm0, %v737_v2, 0.0 }
 0x173   :  { %1000 = vadd.xlane.f32.xlu0 %v999_v15 }
 0x176   :  { %814 = vadd.xlane.f32.xlu1 %v813_v56 }
 0x177   :  { %763 = vadd.xlane.f32.xlu0 %v762_v59  ;;  %v692_v59 = vld [vmem:[#allocation4 + $0x90] sm:$0xff] }
 0x17a   :  { %997 = vadd.xlane.f32.xlu1 %v996_v55 }
 0x17b   :  { %811 = vadd.xlane.f32.xlu0 %v810_v47 }
 0x17e   :  { %559 = vadd.xlane.f32.xlu1 %v558_v11  ;;  %v1014_v11 = vsel %vm86_vm0, %v2402_v19, 0.0 }
 0x17f   :  { %994 = vadd.xlane.f32.xlu0 %v993_v17 }
 0x182   :  { %607 = vadd.xlane.f32.xlu1 %v606_v61  ;;  %v719_v61 = vmul.f32 %v2410_v25, %v2410_v25 }
 0x183   :  { %556 = vadd.xlane.f32.xlu0 %v555_v34  ;;  %v521_v31 = vpop.xlane.xlu1 %520  ;;  %v693_v34 = vld [vmem:[#allocation4 + $0x98] sm:$0xff] }
 0x184   :  { %v569_v62 = vpop.xlane.xlu0 %568  ;;  %v611_v49 = vadd.f32 %v521_v31, %v483_v36  ;;  %v1011_v36 = vsel %vm86_vm0, %v2406_v21, 0.0  ;;  %v735_v21 = vmul.f32 %v2427_v43, %v2427_v43 }
 0x185   :  { %v627_v22 = vadd.f32 %v569_v62, %v499_v32  ;;  %v718_v32 = vmul.f32 %v2398_v18, %v2398_v18 }
 0x186   :  { %644 = vst.msk [vmem:[#allocation3 + $0x10] sm:$0xff] %vm103_vm1, %v611_v49  ;;  %553 = vadd.xlane.f32.xlu1 %v552_v7 }
 0x187   :  { %604 = vadd.xlane.f32.xlu0 %v603_v23  ;;  %660 = vst.msk [vmem:[#allocation3 + $0x90] sm:$0xff] %vm103_vm1, %v627_v22  ;;  %v524_v0 = vpop.xlane.xlu1 %523  ;;  %v900_v23 = vld [vmem:[#allocation5 + $0x10] sm:$0xff] }
 0x188   :  { %v612_v14 = vadd.f32 %v524_v0, %v484_v63  ;;  %v515_v1 = vpop.xlane.xlu0 %514  ;;  %v777_v63 = vsel %vm86_vm0, %v719_v61, 0.0  ;;  %v774_v0 = vsel %vm86_vm0, %v718_v32, 0.0  ;;  %v1041_v61 = vsel %vm86_vm0, %v2438_v30, 0.0  ;;  %v691_v30 = vld [vmem:[#allocation4 + $0x88] sm:$0xff] }
 0x189   :  { %v609_v26 = vadd.f32 %v515_v1, %v481_v16  ;;  %v734_v1 = vmul.f32 %v2421_v39, %v2421_v39 }
 0x18a   :  { %645 = vst.msk [vmem:[#allocation3 + $0x18] sm:$0xff] %vm103_vm1, %v612_v14  ;;  %601 = vadd.xlane.f32.xlu1 %v600_v27  ;;  %v916_v14 = vld [vmem:[#allocation5 + $0x90] sm:$0xff] }
 0x18b   :  { %550 = vadd.xlane.f32.xlu0 %v549_v6  ;;  %642 = vst.msk [vmem:[#allocation3] sm:$0xff] %vm103_vm1, %v609_v26  ;;  %v572_v5 = vpop.xlane.xlu1 %571  ;;  %v901_v6 = vld [vmem:[#allocation5 + $0x18] sm:$0xff] }
 0x18c   :  { %v628_v8 = vadd.f32 %v572_v5, %v500_v35  ;;  %v563_v29 = vpop.xlane.xlu0 %562 }
 0x18d   :  { %v625_v12 = vadd.f32 %v563_v29, %v497_v20  ;;  %v1137_v56 = vld [vmem:[#allocation3 + $0x10] sm:$0xff]  ;;  %v825_v29 = vsel %vm86_vm0, %v735_v21, 0.0  ;;  %v1456_v21 = vstv %s2634_s12 }
 0x18e   :  { %661 = vst.msk [vmem:[#allocation3 + $0x98] sm:$0xff] %vm103_vm1, %v628_v8  ;;  %784 = vadd.xlane.f32.xlu1 %v783_v10  ;;  %v1170_v31 = vmul.f32 %v2604_v46, %v1137_v56  ;;  %v1153_v49 = vld [vmem:[#allocation3 + $0x90] sm:$0xff] }
 0x18f   :  { %598 = vadd.xlane.f32.xlu0 %v597_v4  ;;  %658 = vst.msk [vmem:[#allocation3 + $0x80] sm:$0xff] %vm103_vm1, %v625_v12  ;;  %v566_v40 = vpop.xlane.xlu1 %565  ;;  %v1186_v26 = vmul.f32 %v2604_v46, %v1153_v49  ;;  %v917_v12 = vld [vmem:[#allocation5 + $0x98] sm:$0xff] }
 0x190   :  { %v626_v24 = vadd.f32 %v566_v40, %v498_v13  ;;  %v746_v15 = vpop.xlane.xlu0 %745  ;;  %v1266_v27 = vmul.f32 %v1170_v31, %v1170_v31 }
 0x191   :  { %v836_v38 = vadd.f32 %v746_v15, %v676_v9  ;;  %v1138_v62 = vld [vmem:[#allocation3 + $0x18] sm:$0xff]  ;;  %v482_v9 = vld [vmem:[#allocation3 + $0x8] sm:$0xff]  ;;  %v1282_v28 = vmul.f32 %v1186_v26, %v1186_v26  ;;  %v1008_v26 = vsel %vm86_vm0, %v2450_v51, 0.0 }
 0x192   :  { %659 = vst.msk [vmem:[#allocation3 + $0x88] sm:$0xff] %vm103_vm1, %v626_v24  ;;  %832 = vadd.xlane.f32.xlu1 %v831_v33  ;;  %v1171_v16 = vmul.f32 %v2604_v46, %v1138_v62 }
 0x193   :  { %781 = vadd.xlane.f32.xlu0 %v780_v41  ;;  %868 = vst.msk [vmem:[#allocation4 + $0x10] sm:$0xff] %vm103_vm1, %v836_v38  ;;  %v749_v45 = vpop.xlane.xlu1 %748  ;;  %v822_v41 = vsel %vm86_vm0, %v734_v1, 0.0 }
 0x194   :  { %v837_v47 = vadd.f32 %v749_v45, %v677_v53  ;;  %v794_v55 = vpop.xlane.xlu0 %793  ;;  %v1267_v10 = vmul.f32 %v1171_v16, %v1171_v16 }
 0x195   :  { %v852_v17 = vadd.f32 %v794_v55, %v692_v59  ;;  %v1154_v35 = vld [vmem:[#allocation3 + $0x98] sm:$0xff]  ;;  %v675_v55 = vld [vmem:[#allocation4 + $0x8] sm:$0xff] }
 0x196   :  { %869 = vst.msk [vmem:[#allocation4 + $0x18] sm:$0xff] %vm103_vm1, %v837_v47  ;;  %1015 = vadd.xlane.f32.xlu1 %v1014_v11  ;;  %v1187_v39 = vmul.f32 %v2604_v46, %v1154_v35  ;;  %v1044_v47 = vsel %vm86_vm0, %v2431_v44, 0.0  ;;  %v1151_v35 = vld [vmem:[#allocation3 + $0x80] sm:$0xff] }
 0x197   :  { %829 = vadd.xlane.f32.xlu0 %v828_v42  ;;  %884 = vst.msk [vmem:[#allocation4 + $0x90] sm:$0xff] %vm103_vm1, %v852_v17  ;;  %v797_v19 = vpop.xlane.xlu1 %796 }
 0x198   :  { %v853_v22 = vadd.f32 %v797_v19, %v693_v34  ;;  %v977_v25 = vpop.xlane.xlu0 %976  ;;  %v1283_v17 = vmul.f32 %v1187_v39, %v1187_v39 }
 0x199   :  { %v1067_v7 = vadd.f32 %v977_v25, %v900_v23  ;;  %v1050_v25 = vsel %vm86_vm0, %v2442_v48, 0.0 }
 0x19a   :  { %v1202_v18 = vld [vmem:[#allocation4 + $0x10] sm:$0xff]  ;;  %885 = vst.msk [vmem:[#allocation4 + $0x98] sm:$0xff] %vm103_vm1, %v853_v22  ;;  %778 = vadd.xlane.f32.xlu1 %v777_v63  ;;  %v1005_v63 = vsel %vm86_vm0, %v2446_v50, 0.0 }
 0x19b   :  { %1012 = vadd.xlane.f32.xlu0 %v1011_v36  ;;  %v1234_v37 = vmul.f32 %v1202_v18, %v2604_v46  ;;  %1099 = vst.msk [vmem:[#allocation5 + $0x10] sm:$0xff] %vm103_vm1, %v1067_v7  ;;  %v980_v43 = vpop.xlane.xlu1 %979  ;;  %v674_v36 = vld [vmem:[#allocation4] sm:$0xff] }
 0x19c   :  { %v1068_v4 = vadd.f32 %v980_v43, %v901_v6  ;;  %v1025_v20 = vpop.xlane.xlu0 %1024  ;;  %v690_v6 = vld [vmem:[#allocation4 + $0x80] sm:$0xff] }
 0x19d   :  { %v1298_v3 = vsub.f32 %v1234_v37, %v1266_v27  ;;  %v1203_v5 = vld [vmem:[#allocation4 + $0x18] sm:$0xff]  ;;  %v1083_v8 = vadd.f32 %v1025_v20, %v916_v14  ;;  %v1135_v18 = vld [vmem:[#allocation3] sm:$0xff]  ;;  %v899_v27 = vld [vmem:[#allocation5 + $0x8] sm:$0xff]  ;;  %v1047_v37 = vsel %vm86_vm0, %v2454_v52, 0.0  ;;  %v1062_v52 = vsel %vm86_vm0, %v2467_v58, 0.0 }
 0x19e   :  { %v1235_v13 = vmul.f32 %v1203_v5, %v2604_v46  ;;  %v1218_v2 = vld [vmem:[#allocation4 + $0x90] sm:$0xff]  ;;  %1100 = vst.msk [vmem:[#allocation5 + $0x18] sm:$0xff] %vm103_vm1, %v1068_v4  ;;  %826 = vadd.xlane.f32.xlu1 %v825_v29  ;;  %v898_v43 = vld [vmem:[#allocation5] sm:$0xff]  ;;  %v1056_v4 = vsel %vm86_vm0, %v2459_v54, 0.0  ;;  %v2661_v20 = vmul.f32 %v2604_v46, %v1135_v18  ;;  %v1553_v29 = vstv %s2644_s13 }
 0x19f   :  { %775 = vadd.xlane.f32.xlu0 %v774_v0  ;;  %v1330_v40 = vmax.f32 %v1298_v3, 0.0  ;;  %v1250_v24 = vmul.f32 %v1218_v2, %v2604_v46  ;;  %1115 = vst.msk [vmem:[#allocation5 + $0x90] sm:$0xff] %vm103_vm1, %v1083_v8  ;;  %v1028_v15 = vpop.xlane.xlu1 %1027  ;;  %v1152_v3 = vld [vmem:[#allocation3 + $0x88] sm:$0xff]  ;;  %v1053_v8 = vsel %vm86_vm0, %v2463_v57, 0.0 }
 0x1a0   :  { %v1299_v38 = vsub.f32 %v1235_v13, %v1267_v10  ;;  %v1084_v33 = vadd.f32 %v1028_v15, %v917_v12  ;;  %v518_v53 = vpop.xlane.xlu0 %517  ;;  %v1059_v10 = vsel %vm86_vm0, %v2472_v60, 0.0  ;;  %v1184_v13 = vmul.f32 %v2604_v46, %v1151_v35 }
 0x1a1   :  { %v1362_v42 = vadd.f32 1e-12, %v1330_v40  ;;  %v1314_v59 = vsub.f32 %v1250_v24, %v1282_v28  ;;  %v1219_v45 = vld [vmem:[#allocation4 + $0x98] sm:$0xff]  ;;  %v610_v56 = vadd.f32 %v518_v53, %v482_v9  ;;  %v915_v9 = vld [vmem:[#allocation5 + $0x88] sm:$0xff]  ;;  %v1185_v28 = vmul.f32 %v2604_v46, %v1152_v3  ;;  %v914_v24 = vld [vmem:[#allocation5 + $0x80] sm:$0xff] }
 0x1a2   :  { %v1331_v11 = vmax.f32 %v1299_v38, 0.0  ;;  %v1251_v34 = vmul.f32 %v1219_v45, %v2604_v46  ;;  %1116 = vst.msk [vmem:[#allocation5 + $0x98] sm:$0xff] %vm103_vm1, %v1084_v33  ;;  %1045 = vadd.xlane.f32.xlu1 %v1044_v47  ;;  %v1264_v60 = vmul.f32 %v2661_v20, %v2661_v20 }
 0x1a3   :  { %823 = vadd.xlane.f32.xlu0 %v822_v41  ;;  %1747 = vrsqrt.f32 %v1362_v42  ;;  %v1346_v23 = vmax.f32 %v1314_v59, 0.0  ;;  %643 = vst.msk [vmem:[#allocation3 + $0x8] sm:$0xff] %vm103_vm1, %v610_v56  ;;  %v743_v32 = vpop.xlane.xlu1 %742  ;;  %v1280_v56 = vmul.f32 %v1184_v13, %v1184_v13  ;;  %v501_v13 = vld [vmem:[#allocation3 + $0xa0] sm:$0xff] }
 0x1a4   :  { %v1363_v31 = vadd.f32 1e-12, %v1331_v11  ;;  %v1315_v44 = vsub.f32 %v1251_v34, %v1283_v17  ;;  %v835_v62 = vadd.f32 %v743_v32, %v675_v55  ;;  %v740_v19 = vpop.xlane.xlu0 %739  ;;  %v488_v11 = vld [vmem:[#allocation3 + $0x38] sm:$0xff]  ;;  %v1281_v34 = vmul.f32 %v1185_v28, %v1185_v28  ;;  %v487_v32 = vld [vmem:[#allocation3 + $0x30] sm:$0xff] }
 0x1a5   :  { %v1378_v49 = vadd.f32 1e-12, %v1346_v23  ;;  %v834_v22 = vadd.f32 %v740_v19, %v674_v36 }
 0x1a6   :  { %1749 = vrsqrt.f32 %v1363_v31  ;;  %v1347_v7 = vmax.f32 %v1315_v44, 0.0  ;;  %867 = vst.msk [vmem:[#allocation4 + $0x8] sm:$0xff] %vm103_vm1, %v835_v62  ;;  %1051 = vadd.xlane.f32.xlu1 %v1050_v25 }
 0x1a7   :  { %1042 = vadd.xlane.f32.xlu0 %v1041_v61  ;;  %1751 = vrsqrt.f32 %v1378_v49  ;;  %866 = vst.msk [vmem:[#allocation4] sm:$0xff] %vm103_vm1, %v834_v22  ;;  %v791_v16 = vpop.xlane.xlu1 %790 }
 0x1a8   :  { %v1379_v0 = vadd.f32 1e-12, %v1347_v7  ;;  %v851_v14 = vadd.f32 %v791_v16, %v691_v30  ;;  %v788_v48 = vpop.xlane.xlu0 %787  ;;  %v504_v16 = vld [vmem:[#allocation3 + $0xb8] sm:$0xff] }
 0x1a9   :  { %v850_v1 = vadd.f32 %v788_v48, %v690_v6 }
 0x1aa   :  { %1753 = vrsqrt.f32 %v1379_v0  ;;  %v1136_v50 = vld [vmem:[#allocation3 + $0x8] sm:$0xff]  ;;  %883 = vst.msk [vmem:[#allocation4 + $0x88] sm:$0xff] %vm103_vm1, %v851_v14  ;;  %1009 = vadd.xlane.f32.xlu1 %v1008_v26  ;;  %v503_v0 = vld [vmem:[#allocation3 + $0xb0] sm:$0xff] }
 0x1ab   :  { %1006 = vadd.xlane.f32.xlu0 %v1005_v63  ;;  %v2664_v51 = vmul.f32 %v2604_v46, %v1136_v50  ;;  %882 = vst.msk [vmem:[#allocation4 + $0x80] sm:$0xff] %vm103_vm1, %v850_v1  ;;  %v974_v5 = vpop.xlane.xlu1 %973 }
 0x1ac   :  { %v1066_v12 = vadd.f32 %v974_v5, %v899_v27  ;;  %v971_v54 = vpop.xlane.xlu0 %970 }
 0x1ad   :  { %v1748_v39 = vpop.eup %1747  ;;  %v1201_v2 = vld [vmem:[#allocation4 + $0x8] sm:$0xff]  ;;  %v1065_v41 = vadd.f32 %v971_v54, %v898_v43  ;;  %v1265_v57 = vmul.f32 %v2664_v51, %v2664_v51  ;;  %v485_v43 = vld [vmem:[#allocation3 + $0x20] sm:$0xff] }
 0x1ae   :  { %v1233_v40 = vmul.f32 %v1201_v2, %v2604_v46  ;;  %v1200_v58 = vld [vmem:[#allocation4] sm:$0xff]  ;;  %1098 = vst.msk [vmem:[#allocation5 + $0x8] sm:$0xff] %vm103_vm1, %v1066_v12  ;;  %1057 = vadd.xlane.f32.xlu1 %v1056_v4  ;;  %v1457_v39 = vmul.f32 %v1456_v21, %v2661_v20 }
 0x1af   :  { %1048 = vadd.xlane.f32.xlu0 %v1047_v37  ;;  %v1232_v15 = vmul.f32 %v1200_v58, %v2604_v46  ;;  %1097 = vst.msk [vmem:[#allocation5] sm:$0xff] %vm103_vm1, %v1065_v41  ;;  %v1022_v38 = vpop.xlane.xlu1 %1021  ;;  %v486_v37 = vld [vmem:[#allocation3 + $0x28] sm:$0xff] }
 0x1b0   :  { %v1750_v33 = vpop.eup %1749  ;;  %v1297_v53 = vsub.f32 %v1233_v40, %v1265_v57  ;;  %v1082_v42 = vadd.f32 %v1022_v38, %v915_v9  ;;  %v1019_v59 = vpop.xlane.xlu0 %1018 }
 0x1b1   :  { %v1752_v45 = vpop.eup %1751  ;;  %v1296_v47 = vsub.f32 %v1232_v15, %v1264_v60  ;;  %v1217_v55 = vld [vmem:[#allocation4 + $0x88] sm:$0xff]  ;;  %v1081_v17 = vadd.f32 %v1019_v59, %v914_v24  ;;  %v681_v60 = vld [vmem:[#allocation4 + $0x38] sm:$0xff] }
 0x1b2   :  { %v1329_v61 = vmax.f32 %v1297_v53, 0.0  ;;  %v1249_v36 = vmul.f32 %v1217_v55, %v2604_v46  ;;  %v1216_v23 = vld [vmem:[#allocation4 + $0x80] sm:$0xff]  ;;  %1114 = vst.msk [vmem:[#allocation5 + $0x88] sm:$0xff] %vm103_vm1, %v1082_v42  ;;  %1063 = vadd.xlane.f32.xlu1 %v1062_v52  ;;  %v1458_v52 = vmul.f32 %v1456_v21, %v2664_v51  ;;  %v680_v21 = vld [vmem:[#allocation4 + $0x30] sm:$0xff] }
 0x1b3   :  { %1054 = vadd.xlane.f32.xlu0 %v1053_v8  ;;  %v1328_v31 = vmax.f32 %v1296_v47, 0.0  ;;  %v1248_v44 = vmul.f32 %v1216_v23, %v2604_v46  ;;  %1113 = vst.msk [vmem:[#allocation5 + $0x80] sm:$0xff] %vm103_vm1, %v1081_v17  ;;  %v536_v62 = vpop.xlane.xlu1 %535  ;;  %v697_v47 = vld [vmem:[#allocation4 + $0xb8] sm:$0xff]  ;;  %v696_v55 = vld [vmem:[#allocation4 + $0xb0] sm:$0xff] }
 0x1b4   :  { %v1754_v19 = vpop.eup %1753  ;;  %v1361_v49 = vadd.f32 1e-12, %v1329_v61  ;;  %v1313_v22 = vsub.f32 %v1249_v36, %v1281_v34  ;;  %v616_v25 = vadd.f32 %v536_v62, %v488_v11  ;;  %v533_v30 = vpop.xlane.xlu0 %532  ;;  %v905_v23 = vld [vmem:[#allocation5 + $0x38] sm:$0xff] }
 0x1b5   :  { %v1360_v7 = vadd.f32 1e-12, %v1328_v31  ;;  %v1312_v63 = vsub.f32 %v1248_v44, %v1280_v56  ;;  %v615_v6 = vadd.f32 %v533_v30, %v487_v32  ;;  %v1425_v3 = vld [vmem:[#allocation5 + $0x8] sm:$0xff]  ;;  %v904_v31 = vld [vmem:[#allocation5 + $0x30] sm:$0xff] }
 0x1b6   :  { %1755 = vrsqrt.f32 %v1361_v49  ;;  %v1345_v18 = vmax.f32 %v1313_v22, 0.0  ;;  %649 = vst.msk [vmem:[#allocation3 + $0x38] sm:$0xff] %vm103_vm1, %v616_v25  ;;  %v1424_v12 = vld [vmem:[#allocation5] sm:$0xff]  ;;  %v1490_v2 = vsub.f32 %v1425_v3, %v1458_v52  ;;  %v679_v52 = vld [vmem:[#allocation4 + $0x28] sm:$0xff] }
 0x1b7   :  { %1060 = vadd.xlane.f32.xlu0 %v1059_v10  ;;  %1757 = vrsqrt.f32 %v1360_v7  ;;  %v1344_v14 = vmax.f32 %v1312_v63, 0.0  ;;  %648 = vst.msk [vmem:[#allocation3 + $0x30] sm:$0xff] %vm103_vm1, %v615_v6  ;;  %v584_v48 = vpop.xlane.xlu1 %583  ;;  %v502_v10 = vld [vmem:[#allocation3 + $0xa8] sm:$0xff]  ;;  %v1489_v28 = vsub.f32 %v1424_v12, %v1457_v39 }
 0x1b8   :  { %v1377_v1 = vadd.f32 1e-12, %v1345_v18  ;;  %v632_v26 = vadd.f32 %v584_v48, %v504_v16  ;;  %v581_v27 = vpop.xlane.xlu0 %580  ;;  %v921_v16 = vld [vmem:[#allocation5 + $0xb8] sm:$0xff] }
 0x1b9   :  { %v1376_v35 = vadd.f32 1e-12, %v1344_v14  ;;  %v631_v50 = vadd.f32 %v581_v27, %v503_v0 }
 0x1ba   :  { %1759 = vrsqrt.f32 %v1377_v1  ;;  %665 = vst.msk [vmem:[#allocation3 + $0xb8] sm:$0xff] %vm103_vm1, %v632_v26  ;;  %v920_v1 = vld [vmem:[#allocation5 + $0xb0] sm:$0xff] }
 0x1bb   :  { %1761 = vrsqrt.f32 %v1376_v35  ;;  %664 = vst.msk [vmem:[#allocation3 + $0xb0] sm:$0xff] %vm103_vm1, %v631_v50  ;;  %v530_v4 = vpop.xlane.xlu1 %529 }
 0x1bc   :  { %v614_v5 = vadd.f32 %v530_v4, %v486_v37  ;;  %v527_v8 = vpop.xlane.xlu0 %526 }
 0x1bd   :  { %v613_v54 = vadd.f32 %v527_v8, %v485_v43  ;;  %v1142_v17 = vld [vmem:[#allocation3 + $0x38] sm:$0xff] }
 0x1be   :  { %647 = vst.msk [vmem:[#allocation3 + $0x28] sm:$0xff] %vm103_vm1, %v614_v5  ;;  %v1141_v34 = vld [vmem:[#allocation3 + $0x30] sm:$0xff]  ;;  %v1175_v32 = vmul.f32 %v2604_v46, %v1142_v17 }
 0x1bf   :  { %646 = vst.msk [vmem:[#allocation3 + $0x20] sm:$0xff] %vm103_vm1, %v613_v54  ;;  %v578_v41 = vpop.xlane.xlu1 %577  ;;  %v1174_v44 = vmul.f32 %v2604_v46, %v1141_v34  ;;  %v903_v34 = vld [vmem:[#allocation5 + $0x28] sm:$0xff] }
 0x1c0   :  { %v1756_v9 = vpop.eup %1755  ;;  %v630_v57 = vadd.f32 %v578_v41, %v502_v10  ;;  %v575_v40 = vpop.xlane.xlu0 %574  ;;  %v1271_v18 = vmul.f32 %v1175_v32, %v1175_v32 }
 0x1c1   :  { %v1758_v51 = vpop.eup %1757  ;;  %v1522_v58 = vmul.f32 %v1756_v9, %v1490_v2  ;;  %v629_v24 = vadd.f32 %v575_v40, %v501_v13  ;;  %v1158_v62 = vld [vmem:[#allocation3 + $0xb8] sm:$0xff]  ;;  %v1270_v26 = vmul.f32 %v1174_v44, %v1174_v44  ;;  %v678_v13 = vld [vmem:[#allocation4 + $0x20] sm:$0xff] }
 0x1c2   :  { %v1521_v15 = vmul.f32 %v1758_v51, %v1489_v28  ;;  %663 = vst.msk [vmem:[#allocation3 + $0xa8] sm:$0xff] %vm103_vm1, %v630_v57  ;;  %v1157_v22 = vld [vmem:[#allocation3 + $0xb0] sm:$0xff]  ;;  %v1191_v0 = vmul.f32 %v2604_v46, %v1158_v62 }
 0x1c3   :  { %v1555_v20 = vadd.f32 %v1553_v29, %v1522_v58  ;;  %662 = vst.msk [vmem:[#allocation3 + $0xa0] sm:$0xff] %vm103_vm1, %v629_v24  ;;  %v761_v38 = vpop.xlane.xlu1 %760  ;;  %v1190_v27 = vmul.f32 %v2604_v46, %v1157_v22 }
 0x1c4   :  { %v1760_v33 = vpop.eup %1759  ;;  %v1554_v53 = vadd.f32 %v1553_v29, %v1521_v15  ;;  %v841_v42 = vadd.f32 %v761_v38, %v681_v60  ;;  %v758_v59 = vpop.xlane.xlu0 %757  ;;  %v1287_v12 = vmul.f32 %v1191_v0, %v1191_v0  ;;  %v694_v38 = vld [vmem:[#allocation4 + $0xa0] sm:$0xff] }
 0x1c5   :  { %v1762_v45 = vpop.eup %1761  ;;  %1587 = vst.msk [vmem:[#allocation8 + $0x8] sm:$0xff] %vm103_vm1, %v1555_v20  ;;  %v840_v56 = vadd.f32 %v758_v59, %v680_v21  ;;  %v1286_v2 = vmul.f32 %v1190_v27, %v1190_v27  ;;  %v695_v21 = vld [vmem:[#allocation4 + $0xa8] sm:$0xff] }
 0x1c6   :  { %1586 = vst.msk [vmem:[#allocation8] sm:$0xff] %vm103_vm1, %v1554_v53  ;;  %873 = vst.msk [vmem:[#allocation4 + $0x38] sm:$0xff] %vm103_vm1, %v841_v42  ;;  %v1140_v33 = vld [vmem:[#allocation3 + $0x28] sm:$0xff]  ;;  %v1139_v59 = vld [vmem:[#allocation3 + $0x20] sm:$0xff] }
 0x1c7   :  { %872 = vst.msk [vmem:[#allocation4 + $0x30] sm:$0xff] %vm103_vm1, %v840_v56  ;;  %v809_v11 = vpop.xlane.xlu1 %808 }
 0x1c8   :  { %v857_v61 = vadd.f32 %v809_v11, %v697_v47 }
 0x1ca   :  { %889 = vst.msk [vmem:[#allocation4 + $0xb8] sm:$0xff] %vm103_vm1, %v857_v61  ;;  %v1173_v61 = vmul.f32 %v2604_v46, %v1140_v33 }
 0x1cb   :  { %v992_v19 = vpop.xlane.xlu1 %991 }
 0x1cc   :  { %v806_v36 = vpop.xlane.xlu0 %805  ;;  %v1651_v49 = vld [vmem:[#allocation8 + $0x8] sm:$0xff]  ;;  %v1072_v25 = vadd.f32 %v992_v19, %v905_v23  ;;  %v1172_v23 = vmul.f32 %v2604_v46, %v1139_v59 }
 0x1cd   :  { %v856_v29 = vadd.f32 %v806_v36, %v696_v55  ;;  %1652 = vst [vmem:[%s2831_s5 + $0x8] sm:$0xff] %v1651_v49  ;;  %v1649_v7 = vld [vmem:[#allocation8] sm:$0xff]  ;;  %v1207_v63 = vld [vmem:[#allocation4 + $0x38] sm:$0xff]  ;;  %v1156_v55 = vld [vmem:[#allocation3 + $0xa8] sm:$0xff] }
 0x1ce   :  { %1650 = vst [vmem:[%s2831_s5] sm:$0xff] %v1649_v7  ;;  %v1239_v14 = vmul.f32 %v1207_v63, %v2604_v46  ;;  %v1206_v48 = vld [vmem:[#allocation4 + $0x30] sm:$0xff]  ;;  %1104 = vst.msk [vmem:[#allocation5 + $0x38] sm:$0xff] %vm103_vm1, %v1072_v25  ;;  %v1155_v36 = vld [vmem:[#allocation3 + $0xa0] sm:$0xff] }
 0x1cf   :  { %888 = vst.msk [vmem:[#allocation4 + $0xb0] sm:$0xff] %vm103_vm1, %v856_v29  ;;  %v1238_v35 = vmul.f32 %v1206_v48, %v2604_v46  ;;  %v1040_v50 = vpop.xlane.xlu1 %1039  ;;  %v902_v29 = vld [vmem:[#allocation5 + $0x20] sm:$0xff]  ;;  %v1188_v19 = vmul.f32 %v2604_v46, %v1155_v36  ;;  %v919_v25 = vld [vmem:[#allocation5 + $0xa8] sm:$0xff] }
 0x1d0   :  { %v989_v30 = vpop.xlane.xlu0 %988  ;;  %v1303_v37 = vsub.f32 %v1239_v14, %v1271_v18  ;;  %v1088_v43 = vadd.f32 %v1040_v50, %v921_v16  ;;  %v1268_v16 = vmul.f32 %v1172_v23, %v1172_v23 }
 0x1d1   :  { %v1071_v6 = vadd.f32 %v989_v30, %v904_v31  ;;  %v1302_v3 = vsub.f32 %v1238_v35, %v1270_v26  ;;  %v1223_v5 = vld [vmem:[#allocation4 + $0xb8] sm:$0xff]  ;;  %v1189_v31 = vmul.f32 %v2604_v46, %v1156_v55  ;;  %v1269_v30 = vmul.f32 %v1173_v61, %v1173_v61  ;;  %v505_v61 = vld [vmem:[#allocation3 + $0xc0] sm:$0xff] }
 0x1d2   :  { %v1335_v54 = vmax.f32 %v1303_v37, 0.0  ;;  %v1255_v10 = vmul.f32 %v1223_v5, %v2604_v46  ;;  %1120 = vst.msk [vmem:[#allocation5 + $0xb8] sm:$0xff] %vm103_vm1, %v1088_v43  ;;  %v1284_v50 = vmul.f32 %v1188_v19, %v1188_v19  ;;  %v684_v19 = vld [vmem:[#allocation4 + $0x50] sm:$0xff] }
 0x1d3   :  { %1103 = vst.msk [vmem:[#allocation5 + $0x30] sm:$0xff] %vm103_vm1, %v1071_v6  ;;  %v1334_v41 = vmax.f32 %v1302_v3, 0.0  ;;  %v755_v28 = vpop.xlane.xlu1 %754  ;;  %v918_v6 = vld [vmem:[#allocation5 + $0xa0] sm:$0xff]  ;;  %v1285_v48 = vmul.f32 %v1189_v31, %v1189_v31  ;;  %v492_v3 = vld [vmem:[#allocation3 + $0x58] sm:$0xff] }
 0x1d4   :  { %v1037_v4 = vpop.xlane.xlu0 %1036  ;;  %v1367_v57 = vadd.f32 1e-12, %v1335_v54  ;;  %v1319_v40 = vsub.f32 %v1255_v10, %v1287_v12  ;;  %v839_v51 = vadd.f32 %v755_v28, %v679_v52  ;;  %v491_v12 = vld [vmem:[#allocation3 + $0x50] sm:$0xff] }
 0x1d5   :  { %v1087_v8 = vadd.f32 %v1037_v4, %v920_v1  ;;  %v1366_v24 = vadd.f32 1e-12, %v1334_v41 }
 0x1d6   :  { %v1222_v39 = vld [vmem:[#allocation4 + $0xb0] sm:$0xff]  ;;  %1763 = vrsqrt.f32 %v1367_v57  ;;  %v1351_v20 = vmax.f32 %v1319_v40, 0.0  ;;  %871 = vst.msk [vmem:[#allocation4 + $0x28] sm:$0xff] %vm103_vm1, %v839_v51 }
 0x1d7   :  { %v1254_v9 = vmul.f32 %v1222_v39, %v2604_v46  ;;  %1119 = vst.msk [vmem:[#allocation5 + $0xb0] sm:$0xff] %vm103_vm1, %v1087_v8  ;;  %1765 = vrsqrt.f32 %v1366_v24  ;;  %v803_v42 = vpop.xlane.xlu1 %802  ;;  %v508_v24 = vld [vmem:[#allocation3 + $0xd8] sm:$0xff] }
 0x1d8   :  { %v752_v58 = vpop.xlane.xlu0 %751  ;;  %v1383_v45 = vadd.f32 1e-12, %v1351_v20  ;;  %v855_v56 = vadd.f32 %v803_v42, %v695_v21 }
 0x1d9   :  { %v1318_v60 = vsub.f32 %v1254_v9, %v1286_v2  ;;  %v838_v15 = vadd.f32 %v752_v58, %v678_v13 }
 0x1da   :  { %1767 = vrsqrt.f32 %v1383_v45  ;;  %887 = vst.msk [vmem:[#allocation4 + $0xa8] sm:$0xff] %vm103_vm1, %v855_v56  ;;  %v490_v45 = vld [vmem:[#allocation3 + $0x48] sm:$0xff]  ;;  %v489_v56 = vld [vmem:[#allocation3 + $0x40] sm:$0xff] }
 0x1db   :  { %v1350_v53 = vmax.f32 %v1318_v60, 0.0  ;;  %870 = vst.msk [vmem:[#allocation4 + $0x20] sm:$0xff] %vm103_vm1, %v838_v15  ;;  %v986_v32 = vpop.xlane.xlu1 %985  ;;  %v507_v15 = vld [vmem:[#allocation3 + $0xd0] sm:$0xff] }
 0x1dc   :  { %v800_v47 = vpop.xlane.xlu0 %799  ;;  %v1070_v44 = vadd.f32 %v986_v32, %v903_v34  ;;  %v506_v34 = vld [vmem:[#allocation3 + $0xc8] sm:$0xff] }
 0x1dd   :  { %v1382_v17 = vadd.f32 1e-12, %v1350_v53  ;;  %v854_v11 = vadd.f32 %v800_v47, %v694_v38  ;;  %v1205_v49 = vld [vmem:[#allocation4 + $0x28] sm:$0xff] }
 0x1de   :  { %v1237_v7 = vmul.f32 %v1205_v49, %v2604_v46  ;;  %1102 = vst.msk [vmem:[#allocation5 + $0x28] sm:$0xff] %vm103_vm1, %v1070_v44 }
 0x1df   :  { %1769 = vrsqrt.f32 %v1382_v17  ;;  %886 = vst.msk [vmem:[#allocation4 + $0xa0] sm:$0xff] %vm103_vm1, %v854_v11  ;;  %v1034_v0 = vpop.xlane.xlu1 %1033 }
 0x1e0   :  { %v983_v62 = vpop.xlane.xlu0 %982  ;;  %v1764_v14 = vpop.eup %1763  ;;  %v1301_v1 = vsub.f32 %v1237_v7, %v1269_v30  ;;  %v1086_v26 = vadd.f32 %v1034_v0, %v919_v25 }
 0x1e1   :  { %v1069_v22 = vadd.f32 %v983_v62, %v902_v29  ;;  %v1766_v35 = vpop.eup %1765  ;;  %v1221_v43 = vld [vmem:[#allocation4 + $0xa8] sm:$0xff]  ;;  %v685_v62 = vld [vmem:[#allocation4 + $0x58] sm:$0xff] }
 0x1e2   :  { %v1204_v63 = vld [vmem:[#allocation4 + $0x20] sm:$0xff]  ;;  %v1333_v5 = vmax.f32 %v1301_v1, 0.0  ;;  %v1253_v8 = vmul.f32 %v1221_v43, %v2604_v46  ;;  %1118 = vst.msk [vmem:[#allocation5 + $0xa8] sm:$0xff] %vm103_vm1, %v1086_v26 }
 0x1e3   :  { %v1236_v18 = vmul.f32 %v1204_v63, %v2604_v46  ;;  %1101 = vst.msk [vmem:[#allocation5 + $0x20] sm:$0xff] %vm103_vm1, %v1069_v22  ;;  %v548_v39 = vpop.xlane.xlu1 %547 }
 0x1e4   :  { %v1031_v27 = vpop.xlane.xlu0 %1030  ;;  %v1768_v13 = vpop.eup %1767  ;;  %v1365_v2 = vadd.f32 1e-12, %v1333_v5  ;;  %v1317_v41 = vsub.f32 %v1253_v8, %v1285_v48  ;;  %v620_v9 = vadd.f32 %v548_v39, %v492_v3  ;;  %v682_v39 = vld [vmem:[#allocation4 + $0x40] sm:$0xff] }
 0x1e5   :  { %v1300_v37 = vsub.f32 %v1236_v18, %v1268_v16  ;;  %v1085_v4 = vadd.f32 %v1031_v27, %v918_v6  ;;  %v701_v6 = vld [vmem:[#allocation4 + $0xd8] sm:$0xff]  ;;  %v700_v16 = vld [vmem:[#allocation4 + $0xd0] sm:$0xff] }
 0x1e6   :  { %v1220_v52 = vld [vmem:[#allocation4 + $0xa0] sm:$0xff]  ;;  %1771 = vrsqrt.f32 %v1365_v2  ;;  %v1349_v60 = vmax.f32 %v1317_v41, 0.0  ;;  %653 = vst.msk [vmem:[#allocation3 + $0x58] sm:$0xff] %vm103_vm1, %v620_v9  ;;  %v909_v27 = vld [vmem:[#allocation5 + $0x58] sm:$0xff] }
 0x1e7   :  { %v1332_v54 = vmax.f32 %v1300_v37, 0.0  ;;  %v1252_v10 = vmul.f32 %v1220_v52, %v2604_v46  ;;  %1117 = vst.msk [vmem:[#allocation5 + $0xa0] sm:$0xff] %vm103_vm1, %v1085_v4  ;;  %v596_v20 = vpop.xlane.xlu1 %595  ;;  %v683_v52 = vld [vmem:[#allocation4 + $0x48] sm:$0xff] }
 0x1e8   :  { %v545_v28 = vpop.xlane.xlu0 %544  ;;  %v1381_v38 = vadd.f32 1e-12, %v1349_v60  ;;  %v636_v33 = vadd.f32 %v596_v20, %v508_v24  ;;  %v698_v60 = vld [vmem:[#allocation4 + $0xc0] sm:$0xff] }
 0x1e9   :  { %v1770_v57 = vpop.eup %1769  ;;  %v1364_v40 = vadd.f32 1e-12, %v1332_v54  ;;  %v1316_v51 = vsub.f32 %v1252_v10, %v1284_v50  ;;  %v619_v58 = vadd.f32 %v545_v28, %v491_v12  ;;  %v908_v50 = vld [vmem:[#allocation5 + $0x50] sm:$0xff] }
 0x1ea   :  { %669 = vst.msk [vmem:[#allocation3 + $0xd8] sm:$0xff] %vm103_vm1, %v636_v33 }
 0x1eb   :  { %1773 = vrsqrt.f32 %v1364_v40  ;;  %v1348_v21 = vmax.f32 %v1316_v51, 0.0  ;;  %652 = vst.msk [vmem:[#allocation3 + $0x50] sm:$0xff] %vm103_vm1, %v619_v58  ;;  %v542_v47 = vpop.xlane.xlu1 %541  ;;  %v699_v58 = vld [vmem:[#allocation4 + $0xc8] sm:$0xff] }
 0x1ec   :  { %v593_v53 = vpop.xlane.xlu0 %592  ;;  %1775 = vrsqrt.f32 %v1381_v38  ;;  %v618_v55 = vadd.f32 %v542_v47, %v490_v45 }
 0x1ed   :  { %v1380_v42 = vadd.f32 1e-12, %v1348_v21  ;;  %v635_v59 = vadd.f32 %v593_v53, %v507_v15  ;;  %v1146_v18 = vld [vmem:[#allocation3 + $0x58] sm:$0xff] }
 0x1ee   :  { %651 = vst.msk [vmem:[#allocation3 + $0x48] sm:$0xff] %vm103_vm1, %v618_v55  ;;  %v1179_v35 = vmul.f32 %v2604_v46, %v1146_v18  ;;  %v906_v55 = vld [vmem:[#allocation5 + $0x40] sm:$0xff] }
 0x1ef   :  { %1777 = vrsqrt.f32 %v1380_v42  ;;  %668 = vst.msk [vmem:[#allocation3 + $0xd0] sm:$0xff] %vm103_vm1, %v635_v59  ;;  %v590_v36 = vpop.xlane.xlu1 %589 }
 0x1f0   :  { %v539_v17 = vpop.xlane.xlu0 %538  ;;  %v1772_v29 = vpop.eup %1771  ;;  %v634_v23 = vadd.f32 %v590_v36, %v506_v34  ;;  %v1275_v12 = vmul.f32 %v1179_v35, %v1179_v35 }
 0x1f1   :  { %v617_v11 = vadd.f32 %v539_v17, %v489_v56  ;;  %v907_v56 = vld [vmem:[#allocation5 + $0x48] sm:$0xff] }
 0x1f2   :  { %667 = vst.msk [vmem:[#allocation3 + $0xc8] sm:$0xff] %vm103_vm1, %v634_v23  ;;  %v1145_v14 = vld [vmem:[#allocation3 + $0x50] sm:$0xff]  ;;  %v496_v23 = vld [vmem:[#allocation3 + $0x78] sm:$0xff] }
 0x1f3   :  { %650 = vst.msk [vmem:[#allocation3 + $0x40] sm:$0xff] %vm103_vm1, %v617_v11  ;;  %v773_v49 = vpop.xlane.xlu1 %772  ;;  %v1178_v37 = vmul.f32 %v2604_v46, %v1145_v14 }
 0x1f4   :  { %v587_v32 = vpop.xlane.xlu0 %586  ;;  %v845_v25 = vadd.f32 %v773_v49, %v685_v62  ;;  %v495_v62 = vld [vmem:[#allocation3 + $0x70] sm:$0xff] }
 0x1f5   :  { %v1774_v31 = vpop.eup %1773  ;;  %v633_v44 = vadd.f32 %v587_v32, %v505_v61  ;;  %v1274_v13 = vmul.f32 %v1178_v37, %v1178_v37  ;;  %v1144_v15 = vld [vmem:[#allocation3 + $0x48] sm:$0xff] }
 0x1f6   :  { %v1776_v22 = vpop.eup %1775  ;;  %877 = vst.msk [vmem:[#allocation4 + $0x58] sm:$0xff] %vm103_vm1, %v845_v25  ;;  %v1177_v47 = vmul.f32 %v2604_v46, %v1144_v15 }
 0x1f7   :  { %666 = vst.msk [vmem:[#allocation3 + $0xc0] sm:$0xff] %vm103_vm1, %v633_v44  ;;  %v821_v0 = vpop.xlane.xlu1 %820 }
 0x1f8   :  { %v770_v30 = vpop.xlane.xlu0 %769  ;;  %v861_v48 = vadd.f32 %v821_v0, %v701_v6  ;;  %v1273_v32 = vmul.f32 %v1177_v47, %v1177_v47  ;;  %v511_v0 = vld [vmem:[#allocation3 + $0xf0] sm:$0xff] }
 0x1f9   :  { %v1778_v7 = vpop.eup %1777  ;;  %v844_v63 = vadd.f32 %v770_v30, %v684_v19 }
 0x1fa   :  { %893 = vst.msk [vmem:[#allocation4 + $0xd8] sm:$0xff] %vm103_vm1, %v861_v48  ;;  %v1143_v38 = vld [vmem:[#allocation3 + $0x40] sm:$0xff] }
 0x1fb   :  { %876 = vst.msk [vmem:[#allocation4 + $0x50] sm:$0xff] %vm103_vm1, %v844_v63  ;;  %v1004_v43 = vpop.xlane.xlu1 %1003  ;;  %v1176_v17 = vmul.f32 %v2604_v46, %v1143_v38  ;;  %v705_v38 = vld [vmem:[#allocation4 + $0xf8] sm:$0xff] }
 0x1fc   :  { %v818_v1 = vpop.xlane.xlu0 %817  ;;  %v1076_v4 = vadd.f32 %v1004_v43, %v909_v27 }
 0x1fd   :  { %v860_v26 = vadd.f32 %v818_v1, %v700_v16  ;;  %v1211_v5 = vld [vmem:[#allocation4 + $0x58] sm:$0xff]  ;;  %v1272_v19 = vmul.f32 %v1176_v17, %v1176_v17 }
 0x1fe   :  { %v1243_v54 = vmul.f32 %v1211_v5, %v2604_v46  ;;  %1108 = vst.msk [vmem:[#allocation5 + $0x58] sm:$0xff] %vm103_vm1, %v1076_v4  ;;  %v512_v16 = vld [vmem:[#allocation3 + $0xf8] sm:$0xff]  ;;  %v494_v4 = vld [vmem:[#allocation3 + $0x68] sm:$0xff] }
 0x1ff   :  { %892 = vst.msk [vmem:[#allocation4 + $0xd0] sm:$0xff] %vm103_vm1, %v860_v26  ;;  %v767_v41 = vpop.xlane.xlu1 %766 }
 0x200   :  { %v1001_v3 = vpop.xlane.xlu0 %1000  ;;  %v1307_v9 = vsub.f32 %v1243_v54, %v1275_v12  ;;  %v843_v28 = vadd.f32 %v767_v41, %v683_v52  ;;  %v510_v54 = vld [vmem:[#allocation3 + $0xe8] sm:$0xff] }
 0x201   :  { %v1075_v8 = vadd.f32 %v1001_v3, %v908_v50  ;;  %v493_v3 = vld [vmem:[#allocation3 + $0x60] sm:$0xff]  ;;  %v1227_v17 = vld [vmem:[#allocation4 + $0xd8] sm:$0xff] }
 0x202   :  { %v1210_v10 = vld [vmem:[#allocation4 + $0x50] sm:$0xff]  ;;  %v1339_v24 = vmax.f32 %v1307_v9, 0.0  ;;  %875 = vst.msk [vmem:[#allocation4 + $0x48] sm:$0xff] %vm103_vm1, %v843_v28  ;;  %v689_v9 = vld [vmem:[#allocation4 + $0x78] sm:$0xff] }
 0x203   :  { %v1242_v2 = vmul.f32 %v1210_v10, %v2604_v46  ;;  %1107 = vst.msk [vmem:[#allocation5 + $0x50] sm:$0xff] %vm103_vm1, %v1075_v8  ;;  %v815_v20 = vpop.xlane.xlu1 %814  ;;  %v509_v10 = vld [vmem:[#allocation3 + $0xe0] sm:$0xff]  ;;  %v688_v28 = vld [vmem:[#allocation4 + $0x70] sm:$0xff] }
 0x204   :  { %v764_v57 = vpop.xlane.xlu0 %763  ;;  %v1371_v33 = vadd.f32 1e-12, %v1339_v24  ;;  %v859_v53 = vadd.f32 %v815_v20, %v699_v58  ;;  %v1159_v58 = vld [vmem:[#allocation3 + $0xc0] sm:$0xff] }
 0x205   :  { %v1306_v40 = vsub.f32 %v1242_v2, %v1274_v13  ;;  %v842_v51 = vadd.f32 %v764_v57, %v682_v39  ;;  %v1160_v57 = vld [vmem:[#allocation3 + $0xc8] sm:$0xff] }
 0x206   :  { %1779 = vrsqrt.f32 %v1371_v33  ;;  %891 = vst.msk [vmem:[#allocation4 + $0xc8] sm:$0xff] %vm103_vm1, %v859_v53  ;;  %v704_v33 = vld [vmem:[#allocation4 + $0xf0] sm:$0xff]  ;;  %v1162_v53 = vld [vmem:[#allocation3 + $0xd8] sm:$0xff] }
 0x207   :  { %v1338_v21 = vmax.f32 %v1306_v40, 0.0  ;;  %874 = vst.msk [vmem:[#allocation4 + $0x40] sm:$0xff] %vm103_vm1, %v842_v51  ;;  %v998_v11 = vpop.xlane.xlu1 %997 }
 0x208   :  { %v812_v42 = vpop.xlane.xlu0 %811  ;;  %v1074_v34 = vadd.f32 %v998_v11, %v907_v56  ;;  %v1192_v56 = vmul.f32 %v2604_v46, %v1159_v58  ;;  %v1226_v11 = vld [vmem:[#allocation4 + $0xd0] sm:$0xff]  ;;  %v702_v58 = vld [vmem:[#allocation4 + $0xe0] sm:$0xff] }
 0x209   :  { %v1370_v59 = vadd.f32 1e-12, %v1338_v21  ;;  %v858_v45 = vadd.f32 %v812_v42, %v698_v60  ;;  %v1209_v36 = vld [vmem:[#allocation4 + $0x48] sm:$0xff]  ;;  %v1161_v42 = vld [vmem:[#allocation3 + $0xd0] sm:$0xff] }
 0x20a   :  { %v1241_v31 = vmul.f32 %v1209_v36, %v2604_v46  ;;  %1106 = vst.msk [vmem:[#allocation5 + $0x48] sm:$0xff] %vm103_vm1, %v1074_v34 }
 0x20b   :  { %1781 = vrsqrt.f32 %v1370_v59  ;;  %890 = vst.msk [vmem:[#allocation4 + $0xc0] sm:$0xff] %vm103_vm1, %v858_v45  ;;  %v560_v22 = vpop.xlane.xlu1 %559  ;;  %v1193_v59 = vmul.f32 %v2604_v46, %v1160_v57  ;;  %v703_v57 = vld [vmem:[#allocation4 + $0xe8] sm:$0xff] }
 0x20c   :  { %v995_v61 = vpop.xlane.xlu0 %994  ;;  %v1305_v25 = vsub.f32 %v1241_v31, %v1273_v32  ;;  %v624_v30 = vadd.f32 %v560_v22, %v496_v23  ;;  %v1195_v23 = vmul.f32 %v2604_v46, %v1162_v53  ;;  %v1194_v32 = vmul.f32 %v2604_v46, %v1161_v42  ;;  %v912_v22 = vld [vmem:[#allocation5 + $0x70] sm:$0xff] }
 0x20d   :  { %v1073_v29 = vadd.f32 %v995_v61, %v906_v55  ;;  %v1225_v21 = vld [vmem:[#allocation4 + $0xc8] sm:$0xff] }
 0x20e   :  { %v1208_v44 = vld [vmem:[#allocation4 + $0x40] sm:$0xff]  ;;  %v1337_v18 = vmax.f32 %v1305_v25, 0.0  ;;  %657 = vst.msk [vmem:[#allocation3 + $0x78] sm:$0xff] %vm103_vm1, %v624_v30  ;;  %v1257_v34 = vmul.f32 %v1225_v21, %v2604_v46  ;;  %v1288_v25 = vmul.f32 %v1192_v56, %v1192_v56  ;;  %v1259_v30 = vmul.f32 %v1227_v17, %v2604_v46 }
 0x20f   :  { %v1240_v49 = vmul.f32 %v1208_v44, %v2604_v46  ;;  %1105 = vst.msk [vmem:[#allocation5 + $0x40] sm:$0xff] %vm103_vm1, %v1073_v29  ;;  %v608_v48 = vpop.xlane.xlu1 %607 }
 0x210   :  { %v557_v7 = vpop.xlane.xlu0 %556  ;;  %v1780_v1 = vpop.eup %1779  ;;  %v1369_v26 = vadd.f32 1e-12, %v1337_v18  ;;  %v640_v27 = vadd.f32 %v608_v48, %v512_v16  ;;  %v1290_v48 = vmul.f32 %v1194_v32, %v1194_v32  ;;  %v922_v32 = vld [vmem:[#allocation5 + $0xc0] sm:$0xff] }
 0x211   :  { %v1304_v63 = vsub.f32 %v1240_v49, %v1272_v19  ;;  %v623_v6 = vadd.f32 %v557_v7, %v495_v62  ;;  %v913_v62 = vld [vmem:[#allocation5 + $0x78] sm:$0xff]  ;;  %v1289_v19 = vmul.f32 %v1193_v59, %v1193_v59  ;;  %v1258_v7 = vmul.f32 %v1226_v11, %v2604_v46 }
 0x212   :  { %1783 = vrsqrt.f32 %v1369_v26  ;;  %673 = vst.msk [vmem:[#allocation3 + $0xf8] sm:$0xff] %vm103_vm1, %v640_v27  ;;  %v1224_v45 = vld [vmem:[#allocation4 + $0xc0] sm:$0xff] }
 0x213   :  { %v1336_v14 = vmax.f32 %v1304_v63, 0.0  ;;  %656 = vst.msk [vmem:[#allocation3 + $0x70] sm:$0xff] %vm103_vm1, %v623_v6  ;;  %v554_v5 = vpop.xlane.xlu1 %553  ;;  %v1256_v31 = vmul.f32 %v1224_v45, %v2604_v46  ;;  %v1321_v16 = vsub.f32 %v1257_v34, %v1289_v19 }
 0x214   :  { %v605_v35 = vpop.xlane.xlu0 %604  ;;  %v622_v8 = vadd.f32 %v554_v5, %v494_v4  ;;  %v686_v4 = vld [vmem:[#allocation4 + $0x60] sm:$0xff]  ;;  %v1322_v5 = vsub.f32 %v1258_v7, %v1290_v48 }
 0x215   :  { %v1782_v50 = vpop.eup %1781  ;;  %v1368_v37 = vadd.f32 1e-12, %v1336_v14  ;;  %v639_v43 = vadd.f32 %v605_v35, %v511_v0  ;;  %v1150_v47 = vld [vmem:[#allocation3 + $0x78] sm:$0xff]  ;;  %v1291_v14 = vmul.f32 %v1195_v23, %v1195_v23  ;;  %v1320_v1 = vsub.f32 %v1256_v31, %v1288_v25  ;;  %v687_v35 = vld [vmem:[#allocation4 + $0x68] sm:$0xff] }
 0x216   :  { %655 = vst.msk [vmem:[#allocation3 + $0x68] sm:$0xff] %vm103_vm1, %v622_v8  ;;  %v1183_v49 = vmul.f32 %v2604_v46, %v1150_v47 }
 0x217   :  { %1785 = vrsqrt.f32 %v1368_v37  ;;  %672 = vst.msk [vmem:[#allocation3 + $0xf0] sm:$0xff] %vm103_vm1, %v639_v43  ;;  %v602_v39 = vpop.xlane.xlu1 %601 }
 0x218   :  { %v551_v52 = vpop.xlane.xlu0 %550  ;;  %v638_v13 = vadd.f32 %v602_v39, %v510_v54  ;;  %v1279_v50 = vmul.f32 %v1183_v49, %v1183_v49  ;;  %v1353_v54 = vmax.f32 %v1321_v16, 0.0 }
 0x219   :  { %v621_v12 = vadd.f32 %v551_v52, %v493_v3  ;;  %v1323_v3 = vsub.f32 %v1259_v30, %v1291_v14 }
 0x21a   :  { %671 = vst.msk [vmem:[#allocation3 + $0xe8] sm:$0xff] %vm103_vm1, %v638_v13  ;;  %v1149_v61 = vld [vmem:[#allocation3 + $0x70] sm:$0xff] }
 0x21b   :  { %654 = vst.msk [vmem:[#allocation3 + $0x60] sm:$0xff] %vm103_vm1, %v621_v12  ;;  %v785_v40 = vpop.xlane.xlu1 %784  ;;  %v1182_v63 = vmul.f32 %v2604_v46, %v1149_v61  ;;  %v923_v61 = vld [vmem:[#allocation5 + $0xc8] sm:$0xff] }
 0x21c   :  { %v599_v2 = vpop.xlane.xlu0 %598  ;;  %v1784_v51 = vpop.eup %1783  ;;  %v849_v24 = vadd.f32 %v785_v40, %v689_v9 }
 0x21d   :  { %v637_v41 = vadd.f32 %v599_v2, %v509_v10  ;;  %v1278_v8 = vmul.f32 %v1182_v63, %v1182_v63  ;;  %v1352_v2 = vmax.f32 %v1320_v1, 0.0 }
 0x21e   :  { %881 = vst.msk [vmem:[#allocation4 + $0x78] sm:$0xff] %vm103_vm1, %v849_v24  ;;  %v1165_v40 = vld [vmem:[#allocation3 + $0xf0] sm:$0xff]  ;;  %v1355_v24 = vmax.f32 %v1323_v3, 0.0 }
 0x21f   :  { %670 = vst.msk [vmem:[#allocation3 + $0xe0] sm:$0xff] %vm103_vm1, %v637_v41  ;;  %v833_v55 = vpop.xlane.xlu1 %832  ;;  %v1166_v41 = vld [vmem:[#allocation3 + $0xf8] sm:$0xff]  ;;  %v1198_v17 = vmul.f32 %v2604_v46, %v1165_v40 }
 0x220   :  { %v782_v60 = vpop.xlane.xlu0 %781  ;;  %v865_v36 = vadd.f32 %v833_v55, %v705_v38  ;;  %v1199_v53 = vmul.f32 %v2604_v46, %v1166_v41  ;;  %v1384_v55 = vadd.f32 1e-12, %v1352_v2  ;;  %v1387_v31 = vadd.f32 1e-12, %v1355_v24 }
 0x221   :  { %v1786_v15 = vpop.eup %1785  ;;  %v848_v20 = vadd.f32 %v782_v60, %v688_v28  ;;  %v1354_v60 = vmax.f32 %v1322_v5, 0.0  ;;  %v1294_v63 = vmul.f32 %v1198_v17, %v1198_v17 }
 0x222   :  { %897 = vst.msk [vmem:[#allocation4 + $0xf8] sm:$0xff] %vm103_vm1, %v865_v36  ;;  %v1148_v15 = vld [vmem:[#allocation3 + $0x68] sm:$0xff]  ;;  %v1147_v42 = vld [vmem:[#allocation3 + $0x60] sm:$0xff]  ;;  %v1295_v25 = vmul.f32 %v1199_v53, %v1199_v53 }
 0x223   :  { %880 = vst.msk [vmem:[#allocation4 + $0x70] sm:$0xff] %vm103_vm1, %v848_v20  ;;  %v1016_v6 = vpop.xlane.xlu1 %1015  ;;  %v1181_v36 = vmul.f32 %v2604_v46, %v1148_v15 }
 0x224   :  { %v830_v29 = vpop.xlane.xlu0 %829  ;;  %v1080_v18 = vadd.f32 %v1016_v6, %v913_v62 }
 0x225   :  { %v864_v44 = vadd.f32 %v830_v29, %v704_v33  ;;  %v1215_v26 = vld [vmem:[#allocation4 + $0x78] sm:$0xff]  ;;  %v1385_v33 = vadd.f32 1e-12, %v1353_v54  ;;  %v1164_v29 = vld [vmem:[#allocation3 + $0xe8] sm:$0xff]  ;;  %v1277_v14 = vmul.f32 %v1181_v36, %v1181_v36 }
 0x226   :  { %v1247_v37 = vmul.f32 %v1215_v26, %v2604_v46  ;;  %1112 = vst.msk [vmem:[#allocation5 + $0x78] sm:$0xff] %vm103_vm1, %v1080_v18  ;;  %v1163_v62 = vld [vmem:[#allocation3 + $0xe0] sm:$0xff]  ;;  %v1197_v6 = vmul.f32 %v2604_v46, %v1164_v29 }
 0x227   :  { %896 = vst.msk [vmem:[#allocation4 + $0xf0] sm:$0xff] %vm103_vm1, %v864_v44  ;;  %v779_v12 = vpop.xlane.xlu1 %778  ;;  %v1180_v44 = vmul.f32 %v2604_v46, %v1147_v42  ;;  %v1196_v48 = vmul.f32 %v2604_v46, %v1163_v62 }
 0x228   :  { %v1013_v0 = vpop.xlane.xlu0 %1012  ;;  %v1311_v10 = vsub.f32 %v1247_v37, %v1279_v50  ;;  %v847_v39 = vadd.f32 %v779_v12, %v687_v35  ;;  %v910_v35 = vld [vmem:[#allocation5 + $0x60] sm:$0xff] }
 0x229   :  { %v1079_v27 = vadd.f32 %v1013_v0, %v912_v22  ;;  %v1231_v20 = vld [vmem:[#allocation4 + $0xf8] sm:$0xff]  ;;  %v1386_v22 = vadd.f32 1e-12, %v1354_v60  ;;  %v1276_v50 = vmul.f32 %v1180_v44, %v1180_v44 }
 0x22a   :  { %v1214_v43 = vld [vmem:[#allocation4 + $0x70] sm:$0xff]  ;;  %v1343_v51 = vmax.f32 %v1311_v10, 0.0  ;;  %879 = vst.msk [vmem:[#allocation4 + $0x68] sm:$0xff] %vm103_vm1, %v847_v39  ;;  %v1263_v23 = vmul.f32 %v1231_v20, %v2604_v46  ;;  %v925_v0 = vld [vmem:[#allocation5 + $0xd8] sm:$0xff]  ;;  %v911_v39 = vld [vmem:[#allocation5 + $0x68] sm:$0xff] }
 0x22b   :  { %v1246_v52 = vmul.f32 %v1214_v43, %v2604_v46  ;;  %1111 = vst.msk [vmem:[#allocation5 + $0x70] sm:$0xff] %vm103_vm1, %v1079_v27  ;;  %v827_v38 = vpop.xlane.xlu1 %826  ;;  %v929_v44 = vld [vmem:[#allocation5 + $0xf8] sm:$0xff] }
 0x22c   :  { %v776_v13 = vpop.xlane.xlu0 %775  ;;  %v1375_v59 = vadd.f32 1e-12, %v1343_v51  ;;  %v863_v56 = vadd.f32 %v827_v38, %v703_v57  ;;  %v1327_v1 = vsub.f32 %v1263_v23, %v1295_v25  ;;  %v924_v57 = vld [vmem:[#allocation5 + $0xd0] sm:$0xff] }
 0x22d   :  { %v1310_v9 = vsub.f32 %v1246_v52, %v1278_v8  ;;  %v846_v28 = vadd.f32 %v776_v13, %v686_v4  ;;  %v1293_v52 = vmul.f32 %v1197_v6, %v1197_v6  ;;  %v1292_v13 = vmul.f32 %v1196_v48, %v1196_v48 }
 0x22e   :  { %v1230_v45 = vld [vmem:[#allocation4 + $0xf0] sm:$0xff]  ;;  %1787 = vrsqrt.f32 %v1375_v59  ;;  %895 = vst.msk [vmem:[#allocation4 + $0xe8] sm:$0xff] %vm103_vm1, %v863_v56  ;;  %v1359_v2 = vmax.f32 %v1327_v1, 0.0 }
 0x22f   :  { %v1342_v21 = vmax.f32 %v1310_v9, 0.0  ;;  %878 = vst.msk [vmem:[#allocation4 + $0x60] sm:$0xff] %vm103_vm1, %v846_v28  ;;  %v1262_v19 = vmul.f32 %v1230_v45, %v2604_v46  ;;  %v1046_v49 = vpop.xlane.xlu1 %1045  ;;  %v927_v45 = vld [vmem:[#allocation5 + $0xe8] sm:$0xff] }
 0x230   :  { %v824_v47 = vpop.xlane.xlu0 %823  ;;  %v1090_v30 = vadd.f32 %v1046_v49, %v923_v61  ;;  %v1391_v23 = vadd.f32 1e-12, %v1359_v2  ;;  %v928_v49 = vld [vmem:[#allocation5 + $0xf0] sm:$0xff] }
 0x231   :  { %v1374_v11 = vadd.f32 1e-12, %v1342_v21  ;;  %v862_v34 = vadd.f32 %v824_v47, %v702_v58  ;;  %v1213_v16 = vld [vmem:[#allocation4 + $0x68] sm:$0xff]  ;;  %v1326_v37 = vsub.f32 %v1262_v19, %v1294_v63 }
 0x232   :  { %v1245_v26 = vmul.f32 %v1213_v16, %v2604_v46  ;;  %1122 = vst.msk [vmem:[#allocation5 + $0xc8] sm:$0xff] %vm103_vm1, %v1090_v30 }
 0x233   :  { %1789 = vrsqrt.f32 %v1374_v11  ;;  %894 = vst.msk [vmem:[#allocation4 + $0xe0] sm:$0xff] %vm103_vm1, %v862_v34  ;;  %v1052_v4 = vpop.xlane.xlu1 %1051  ;;  %v1358_v40 = vmax.f32 %v1326_v37, 0.0 }
 0x234   :  { %1791 = vrsqrt.f32 %v1385_v33  ;;  %v1043_v7 = vpop.xlane.xlu0 %1042  ;;  %v1309_v3 = vsub.f32 %v1245_v26, %v1277_v14  ;;  %v1092_v5 = vadd.f32 %v1052_v4, %v925_v0 }
 0x235   :  { %1793 = vrsqrt.f32 %v1384_v55  ;;  %v1089_v18 = vadd.f32 %v1043_v7, %v922_v32  ;;  %v1229_v54 = vld [vmem:[#allocation4 + $0xe8] sm:$0xff]  ;;  %v926_v55 = vld [vmem:[#allocation5 + $0xe0] sm:$0xff]  ;;  %v1390_v19 = vadd.f32 1e-12, %v1358_v40 }
 0x236   :  { %v1212_v27 = vld [vmem:[#allocation4 + $0x60] sm:$0xff]  ;;  %1795 = vrsqrt.f32 %v1387_v31  ;;  %v1341_v41 = vmax.f32 %v1309_v3, 0.0  ;;  %v1261_v9 = vmul.f32 %v1229_v54, %v2604_v46  ;;  %1124 = vst.msk [vmem:[#allocation5 + $0xd8] sm:$0xff] %vm103_vm1, %v1092_v5 }
 0x237   :  { %v1244_v43 = vmul.f32 %v1212_v27, %v2604_v46  ;;  %1121 = vst.msk [vmem:[#allocation5 + $0xc0] sm:$0xff] %vm103_vm1, %v1089_v18  ;;  %1797 = vrsqrt.f32 %v1386_v22  ;;  %v1010_v24 = vpop.xlane.xlu1 %1009 }
 0x238   :  { %v1007_v8 = vpop.xlane.xlu0 %1006  ;;  %v1788_v60 = vpop.eup %1787  ;;  %v1373_v15 = vadd.f32 1e-12, %v1341_v41  ;;  %v1325_v21 = vsub.f32 %v1261_v9, %v1293_v52  ;;  %v1078_v20 = vadd.f32 %v1010_v24, %v911_v39 }
 0x239   :  { %v1308_v12 = vsub.f32 %v1244_v43, %v1276_v50  ;;  %v1077_v10 = vadd.f32 %v1007_v8, %v910_v35 }
 0x23a   :  { %v1228_v28 = vld [vmem:[#allocation4 + $0xe0] sm:$0xff]  ;;  %1799 = vrsqrt.f32 %v1373_v15  ;;  %v1357_v47 = vmax.f32 %v1325_v21, 0.0  ;;  %1110 = vst.msk [vmem:[#allocation5 + $0x68] sm:$0xff] %vm103_vm1, %v1078_v20 }
 0x23b   :  { %v1340_v51 = vmax.f32 %v1308_v12, 0.0  ;;  %v1260_v58 = vmul.f32 %v1228_v28, %v2604_v46  ;;  %1109 = vst.msk [vmem:[#allocation5 + $0x60] sm:$0xff] %vm103_vm1, %v1077_v10  ;;  %v1058_v11 = vpop.xlane.xlu1 %1057 }
 0x23c   :  { %v1049_v38 = vpop.xlane.xlu0 %1048  ;;  %v1389_v34 = vadd.f32 1e-12, %v1357_v47  ;;  %v1094_v61 = vadd.f32 %v1058_v11, %v927_v45 }
 0x23d   :  { %v1790_v33 = vpop.eup %1789  ;;  %v1372_v53 = vadd.f32 1e-12, %v1340_v51  ;;  %v1324_v42 = vsub.f32 %v1260_v58, %v1292_v13  ;;  %v1091_v59 = vadd.f32 %v1049_v38, %v924_v57 }
 0x23e   :  { %v1792_v56 = vpop.eup %1791  ;;  %1126 = vst.msk [vmem:[#allocation5 + $0xe8] sm:$0xff] %vm103_vm1, %v1094_v61 }
 0x23f   :  { %v1794_v46 = vpop.eup %1793  ;;  %1801 = vrsqrt.f32 %v1372_v53  ;;  %v1356_v17 = vmax.f32 %v1324_v42, 0.0  ;;  %1123 = vst.msk [vmem:[#allocation5 + $0xd0] sm:$0xff] %vm103_vm1, %v1091_v59  ;;  %v1064_v22 = vpop.xlane.xlu1 %1063 }
 0x240   :  { %v1055_v36 = vpop.xlane.xlu0 %1054  ;;  %v1796_v29 = vpop.eup %1795  ;;  %1803 = vrsqrt.f32 %v1389_v34  ;;  %v1096_v25 = vadd.f32 %v1064_v22, %v929_v44 }
 0x241   :  { %v1388_v32 = vadd.f32 1e-12, %v1356_v17  ;;  %v1093_v31 = vadd.f32 %v1055_v36, %v926_v55  ;;  %v1798_v62 = vpop.eup %1797 }
 0x242   :  { %1128 = vst.msk [vmem:[#allocation5 + $0xf8] sm:$0xff] %vm103_vm1, %v1096_v25 }
 0x243   :  { %1805 = vrsqrt.f32 %v1388_v32  ;;  %1125 = vst.msk [vmem:[#allocation5 + $0xe0] sm:$0xff] %vm103_vm1, %v1093_v31 }
 0x244   :  { %v1061_v30 = vpop.xlane.xlu0 %1060  ;;  %1807 = vrsqrt.f32 %v1391_v23  ;;  %v1800_v63 = vpop.eup %1799 }
 0x245   :  { %v1095_v7 = vadd.f32 %v1061_v30, %v928_v49  ;;  %1809 = vrsqrt.f32 %v1390_v19 }
 0x247   :  { %1127 = vst.msk [vmem:[#allocation5 + $0xf0] sm:$0xff] %vm103_vm1, %v1095_v7 }
 0x249   :  { %v1802_v6 = vpop.eup %1801 }
 0x24a   :  { %v1804_v16 = vpop.eup %1803 }
 0x24d   :  { %v1806_v18 = vpop.eup %1805 }
 0x24e   :  { %v1808_v0 = vpop.eup %1807 }
 0x24f   :  { %v1810_v14 = vpop.eup %1809 }
 0x250   :  { %1658 = vsyncpa [#allocation7], 1 }

</bundles_post_ra>
